<compile_context>
chip_gen: v7x
topology: tpu7x:2x2x1
jax: 0.10.0
libtpu: 0.0.40
codegen_flags: <defaults>
</compile_context>

<pallas_src>
import functools

import jax
import jax.numpy as jnp
from jax import lax
from jax.experimental import pallas as pl
from jax.experimental.pallas import tpu as pltpu


def _round_up(a, b):
    return (a + b - 1) // b * b


def conv_stats_kernel(x_ref, w_ref, mask_ref, y_ref, psum_ref, psq_ref, col_ref,
                      *, offs, cin):
    """3x3x3 conv as a single K=27*cin GEMM + masked per-channel partial sums.

    Grid: (N [parallel], Cout_tiles [arbitrary]).
      x_ref   : (1, cin, L)   flattened padded input for batch element n
      w_ref   : (ct, K)       weight tile, K = 27*cin
      mask_ref: (1, Lv)       1.0 at valid output positions, 0.0 elsewhere
      y_ref   : (1, ct, Lv)   streamed lane-dense conv output tile
      psum_ref: (1, ct, 1)    per-(batch, channel) partial sum       (no residency)
      psq_ref : (1, ct, 1)    per-(batch, channel) partial sum of sq (no residency)
      col_ref : (K, Lv)       VMEM scratch: 27 stacked lane-shifted windows (im2col)
    """
    c = pl.program_id(1)
    lv = col_ref.shape[1]

    # Build the im2col operand once per batch element; channel tiles c > 0 reuse it.
    @pl.when(c == 0)
    def _():
        x = x_ref[0]                                   # (cin, L)
        for t, off in enumerate(offs):                 # 27 static lane-offset windows
            col_ref[t * cin:(t + 1) * cin, :] = x[:, off:off + lv].astype(col_ref.dtype)

    # One MXU GEMM: (ct, K) @ (K, Lv) -> (ct, Lv), f32 accumulation.
    acc = jnp.dot(w_ref[...], col_ref[...], preferred_element_type=jnp.float32)
    y_ref[0] = acc.astype(y_ref.dtype)

    # BatchNorm batch statistics over valid output positions only (always f32, from acc).
    am = acc * mask_ref[...]
    psum_ref[0] = jnp.sum(am, axis=1, keepdims=True)
    psq_ref[0] = jnp.sum(am * acc, axis=1, keepdims=True)


def cb_forward(x_ncdhw, weight_oidhw, gamma, beta, eps=1e-3,
               compute_dtype=jnp.float32):
    """Forward of CB: conv3d(3x3x3, pad=1, no bias) + BatchNorm3d (batch statistics)."""
    # TODO(synk): BatchNorm3d running-stat buffer updates (momentum=0.95) are a
    # training-time side effect and not part of the returned forward value.
    N, Cin, D, H, W = x_ncdhw.shape
    Cout = weight_oidhw.shape[0]
    Dp, Hp, Wp = D + 2, H + 2, W + 2
    Pp = Dp * Hp * Wp
    Lv = _round_up(Pp, 128)                        # lane-dense conv-output length
    max_off = 2 * (Hp * Wp + Wp + 1)               # largest tap offset (kd=kh=kw=2)
    L = _round_up(max_off + Lv, 128)               # padded-input lane length

    # Sublane-align each tap's channel block (8 rows for f32, 16 for packed bf16) so
    # every im2col store is a full-tile store.
    sub = 16 if jnp.dtype(compute_dtype) == jnp.dtype(jnp.bfloat16) else 8
    cin = _round_up(Cin, sub)
    K = 27 * cin

    # Glue: channels-first, zero-pad channels (to cin) and spatial dims, flatten with
    # halo, pad lanes.  Cast once to compute dtype (halves the x DMA in the bf16 path).
    xp = jnp.pad(x_ncdhw, ((0, 0), (0, cin - Cin), (1, 1), (1, 1), (1, 1)))
    xf = jnp.pad(xp.reshape(N, cin, Pp), ((0, 0), (0, 0), (0, L - Pp)))
    xf = xf.astype(compute_dtype)                                      # (N, cin, L)

    # (Cout, Cin, 3,3,3) -> (Cout, 27, cin) -> (Cout, K); tap order (kd,kh,kw) matches offs.
    w5 = jnp.transpose(weight_oidhw, (0, 2, 3, 4, 1)).reshape(Cout, 27, Cin)
    w_mat = jnp.pad(w5, ((0, 0), (0, 0), (0, cin - Cin))).reshape(Cout, K)
    w_mat = w_mat.astype(compute_dtype)

    # Validity mask over the padded-stride flat output positions (stats stay f32).
    mask = jnp.zeros((Dp, Hp, Wp), jnp.float32).at[:D, :H, :W].set(1.0).reshape(1, Pp)
    mask = jnp.pad(mask, ((0, 0), (0, Lv - Pp)))                       # (1, Lv)

    offs = tuple(kd * Hp * Wp + kh * Wp + kw
                 for kd in range(3) for kh in range(3) for kw in range(3))

    ct = Cout if Cout <= 128 else 128              # channel tile
    assert Cout % ct == 0
    n_ct = Cout // ct

    y_flat, psum, psq = pl.pallas_call(
        functools.partial(conv_stats_kernel, offs=offs, cin=cin),
        out_shape=(
            jax.ShapeDtypeStruct((N, Cout, Lv), compute_dtype),   # streamed conv out
            jax.ShapeDtypeStruct((N, Cout, 1), jnp.float32),      # partial sums
            jax.ShapeDtypeStruct((N, Cout, 1), jnp.float32),      # partial sums of sq
        ),
        grid_spec=pltpu.PrefetchScalarGridSpec(
            num_scalar_prefetch=0,
            grid=(N, n_ct),                        # batch outer, channel tiles inner
            in_specs=[
                pl.BlockSpec((1, cin, L), lambda n, c: (n, 0, 0)),
                pl.BlockSpec((ct, K), lambda n, c: (c, 0)),
                pl.BlockSpec((1, Lv), lambda n, c: (0, 0)),
            ],
            out_specs=(
                pl.BlockSpec((1, ct, Lv), lambda n, c: (n, c, 0)),
                pl.BlockSpec((1, ct, 1), lambda n, c: (n, c, 0)),
                pl.BlockSpec((1, ct, 1), lambda n, c: (n, c, 0)),
            ),
            scratch_shapes=[pltpu.VMEM((K, Lv), compute_dtype)],
        ),
        # Batch axis is truly parallel (per-batch partial stats, no residency) so v7x
        # can split it across its 2 TensorCores.  The channel-tile axis stays
        # "arbitrary" so the im2col scratch built at c == 0 is visible to c > 0 on
        # the same core.
        compiler_params=pltpu.CompilerParams(
            dimension_semantics=("parallel", "arbitrary")),
    )(xf, w_mat, mask)

    # --- BN statistics + affine in plain JAX, folded into the output slice copy ----
    count = float(N * D * H * W)
    ch_sum = jnp.sum(psum, axis=0)                 # (Cout, 1)
    ch_sq = jnp.sum(psq, axis=0)                   # (Cout, 1)
    mean = ch_sum / count
    var = ch_sq / count - mean * mean              # biased variance, train-mode BN
    inv = lax.rsqrt(var + eps)
    g = gamma.reshape(Cout, 1).astype(jnp.float32)
    b = beta.reshape(Cout, 1).astype(jnp.float32)
    scale = (g * inv).reshape(1, Cout, 1, 1, 1)
    shift = (b - mean * g * inv).reshape(1, Cout, 1, 1, 1)

    # Valid conv values live at q = d*Hp*Wp + h*Wp + w.  XLA fuses the per-channel
    # FMA into the copy this slice already materializes (no extra streamed pass).
    y = y_flat[:, :, :Pp].reshape(N, Cout, Dp, Hp, Wp)[:, :, :D, :H, :W]
    return y.astype(jnp.float32) * scale + shift


def cb_reference(x_ncdhw, weight_oidhw, gamma, beta, eps=1e-3):
    """Pure-JAX reference (same semantics as PyTorch CB.forward in train mode)."""
    conv = lax.conv_general_dilated(
        x_ncdhw, weight_oidhw,
        window_strides=(1, 1, 1),
        padding=((1, 1), (1, 1), (1, 1)),
        dimension_numbers=("NCDHW", "OIDHW", "NCDHW"))
    mean = conv.mean(axis=(0, 2, 3, 4), keepdims=True)
    var = conv.var(axis=(0, 2, 3, 4), keepdims=True)      # biased, like BN train mode
    g = gamma.reshape(1, -1, 1, 1, 1)
    b = beta.reshape(1, -1, 1, 1, 1)
    return g * (conv - mean) * lax.rsqrt(var + eps) + b


if __name__ == "__main__":
    key = jax.random.PRNGKey(0)
    k_x, k_w = jax.random.split(key)

    N, Cin, Cout, D, H, W = 2, 4, 8, 8, 8, 8
    x = jax.random.normal(k_x, (N, Cin, D, H, W), dtype=jnp.float32)
    # Conv3d weight (no bias).  Deterministic init (stand-in for kaiming-uniform).
    weight = 0.1 * jax.random.normal(k_w, (Cout, Cin, 3, 3, 3), dtype=jnp.float32)
    # BatchNorm3d default affine params: gamma=1, beta=0.
    gamma = jnp.ones((Cout,), dtype=jnp.float32)
    beta = jnp.zeros((Cout,), dtype=jnp.float32)

    ref = cb_reference(x, weight, gamma, beta)
    cb = jax.jit(cb_forward, static_argnames=("eps", "compute_dtype"))

    # f32 data path: strict 1e-3 check against the f32 reference.
    out = jax.block_until_ready(cb(x, weight, gamma, beta, eps=1e-3,
                                   compute_dtype=jnp.float32))
    assert out.shape == (N, Cout, D, H, W)
    err_f32 = float(jnp.max(jnp.abs(out - ref)))
    assert jnp.allclose(out, ref, atol=1e-3, rtol=1e-3), err_f32

    # bf16 GEMM-operand / bf16-intermediate path (f32 accumulation & statistics):
    # looser tolerance to allow for bf16 operand quantization of the conv values.
    out_bf16 = jax.block_until_ready(cb(x, weight, gamma, beta, eps=1e-3,
                                        compute_dtype=jnp.bfloat16))
    err_bf16 = float(jnp.max(jnp.abs(out_bf16 - ref)))
    assert jnp.allclose(out_bf16, ref, atol=5e-2, rtol=5e-2), err_bf16

    print("KERNEL_OK")
</pallas_src>

<mosaic_0001>
module attributes {stable_mosaic.version = 11 : i64} {
  func.func @conv_stats_kernel(%arg0: i32, %arg1: i32, %arg2: memref<1x8x1280xf32, #tpu.memory_space<vmem>>, %arg3: memref<8x216xf32, #tpu.memory_space<vmem>>, %arg4: memref<1x1024xf32, #tpu.memory_space<vmem>>, %arg5: memref<1x8x1024xf32, #tpu.memory_space<vmem>>, %arg6: memref<1x8x1xf32, #tpu.memory_space<vmem>>, %arg7: memref<1x8x1xf32, #tpu.memory_space<vmem>>, %arg8: memref<216x1024xf32, #tpu.memory_space<vmem>>) attributes {dimension_semantics = [#tpu.dimension_semantics<parallel>, #tpu.dimension_semantics<arbitrary>], iteration_bounds = array<i64: 2, 1>, scalar_prefetch = 0 : i64, scratch_operands = 1 : i64, tpu.core_type = #tpu.core_type<tc>, window_params = [{transform_indices = @transform_0, window_bounds = array<i64: 1, 8, 1280>}, {transform_indices = @transform_1, window_bounds = array<i64: 8, 216>}, {pipeline_mode = #tpu.pipeline_mode<synchronous>, transform_indices = @transform_2, window_bounds = array<i64: 1, 1024>}, {transform_indices = @transform_3, window_bounds = array<i64: 1, 8, 1024>}, {transform_indices = @transform_4, window_bounds = array<i64: 1, 8, 1>}, {transform_indices = @transform_5, window_bounds = array<i64: 1, 8, 1>}]} {
    %c0_i32 = arith.constant 0 : i32
    %0 = arith.cmpi eq, %arg1, %c0_i32 : i32
    %1 = arith.extui %0 : i1 to i32
    %c0_i32_0 = arith.constant 0 : i32
    %2 = arith.cmpi ne, %1, %c0_i32_0 : i32
    scf.if %2 {
      %c0_17 = arith.constant 0 : index
      %c0_18 = arith.constant 0 : index
      %c0_19 = arith.constant 0 : index
      %23 = vector.load %arg2[%c0_17, %c0_18, %c0_19] : memref<1x8x1280xf32, #tpu.memory_space<vmem>>, vector<1x8x1280xf32>
      %24 = vector.shape_cast %23 : vector<1x8x1280xf32> to vector<8x1280xf32>
      %25 = vector.extract_strided_slice %24 {offsets = [0, 0], sizes = [8, 1024], strides = [1, 1]} : vector<8x1280xf32> to vector<8x1024xf32>
      %c0_20 = arith.constant 0 : index
      %c0_21 = arith.constant 0 : index
      %26 = vector.load %arg8[%c0_20, %c0_21] : memref<216x1024xf32, #tpu.memory_space<vmem>>, vector<8x1024xf32>
      tpu.vector_store %arg8[%c0_20, %c0_21], %25 {strides = array<i32>} : memref<216x1024xf32, #tpu.memory_space<vmem>>, vector<8x1024xf32>,
      %27 = vector.extract_strided_slice %24 {offsets = [0, 1], sizes = [8, 1024], strides = [1, 1]} : vector<8x1280xf32> to vector<8x1024xf32>
      %c8 = arith.constant 8 : index
      %c0_22 = arith.constant 0 : index
      %28 = vector.load %arg8[%c8, %c0_22] : memref<216x1024xf32, #tpu.memory_space<vmem>>, vector<8x1024xf32>
      tpu.vector_store %arg8[%c8, %c0_22], %27 {strides = array<i32>} : memref<216x1024xf32, #tpu.memory_space<vmem>>, vector<8x1024xf32>,
      %29 = vector.extract_strided_slice %24 {offsets = [0, 2], sizes = [8, 1024], strides = [1, 1]} : vector<8x1280xf32> to vector<8x1024xf32>
      %c16 = arith.constant 16 : index
      %c0_23 = arith.constant 0 : index
      %30 = vector.load %arg8[%c16, %c0_23] : memref<216x1024xf32, #tpu.memory_space<vmem>>, vector<8x1024xf32>
      tpu.vector_store %arg8[%c16, %c0_23], %29 {strides = array<i32>} : memref<216x1024xf32, #tpu.memory_space<vmem>>, vector<8x1024xf32>,
      %31 = vector.extract_strided_slice %24 {offsets = [0, 10], sizes = [8, 1024], strides = [1, 1]} : vector<8x1280xf32> to vector<8x1024xf32>
      %c24 = arith.constant 24 : index
      %c0_24 = arith.constant 0 : index
      %32 = vector.load %arg8[%c24, %c0_24] : memref<216x1024xf32, #tpu.memory_space<vmem>>, vector<8x1024xf32>
      tpu.vector_store %arg8[%c24, %c0_24], %31 {strides = array<i32>} : memref<216x1024xf32, #tpu.memory_space<vmem>>, vector<8x1024xf32>,
      %33 = vector.extract_strided_slice %24 {offsets = [0, 11], sizes = [8, 1024], strides = [1, 1]} : vector<8x1280xf32> to vector<8x1024xf32>
      %c32 = arith.constant 32 : index
      %c0_25 = arith.constant 0 : index
      %34 = vector.load %arg8[%c32, %c0_25] : memref<216x1024xf32, #tpu.memory_space<vmem>>, vector<8x1024xf32>
      tpu.vector_store %arg8[%c32, %c0_25], %33 {strides = array<i32>} : memref<216x1024xf32, #tpu.memory_space<vmem>>, vector<8x1024xf32>,
      %35 = vector.extract_strided_slice %24 {offsets = [0, 12], sizes = [8, 1024], strides = [1, 1]} : vector<8x1280xf32> to vector<8x1024xf32>
      %c40 = arith.constant 40 : index
      %c0_26 = arith.constant 0 : index
      %36 = vector.load %arg8[%c40, %c0_26] : memref<216x1024xf32, #tpu.memory_space<vmem>>, vector<8x1024xf32>
      tpu.vector_store %arg8[%c40, %c0_26], %35 {strides = array<i32>} : memref<216x1024xf32, #tpu.memory_space<vmem>>, vector<8x1024xf32>,
      %37 = vector.extract_strided_slice %24 {offsets = [0, 20], sizes = [8, 1024], strides = [1, 1]} : vector<8x1280xf32> to vector<8x1024xf32>
      %c48 = arith.constant 48 : index
      %c0_27 = arith.constant 0 : index
      %38 = vector.load %arg8[%c48, %c0_27] : memref<216x1024xf32, #tpu.memory_space<vmem>>, vector<8x1024xf32>
      tpu.vector_store %arg8[%c48, %c0_27], %37 {strides = array<i32>} : memref<216x1024xf32, #tpu.memory_space<vmem>>, vector<8x1024xf32>,
      %39 = vector.extract_strided_slice %24 {offsets = [0, 21], sizes = [8, 1024], strides = [1, 1]} : vector<8x1280xf32> to vector<8x1024xf32>
      %c56 = arith.constant 56 : index
      %c0_28 = arith.constant 0 : index
      %40 = vector.load %arg8[%c56, %c0_28] : memref<216x1024xf32, #tpu.memory_space<vmem>>, vector<8x1024xf32>
      tpu.vector_store %arg8[%c56, %c0_28], %39 {strides = array<i32>} : memref<216x1024xf32, #tpu.memory_space<vmem>>, vector<8x1024xf32>,
      %41 = vector.extract_strided_slice %24 {offsets = [0, 22], sizes = [8, 1024], strides = [1, 1]} : vector<8x1280xf32> to vector<8x1024xf32>
      %c64 = arith.constant 64 : index
      %c0_29 = arith.constant 0 : index
      %42 = vector.load %arg8[%c64, %c0_29] : memref<216x1024xf32, #tpu.memory_space<vmem>>, vector<8x1024xf32>
      tpu.vector_store %arg8[%c64, %c0_29], %41 {strides = array<i32>} : memref<216x1024xf32, #tpu.memory_space<vmem>>, vector<8x1024xf32>,
      %43 = vector.extract_strided_slice %24 {offsets = [0, 100], sizes = [8, 1024], strides = [1, 1]} : vector<8x1280xf32> to vector<8x1024xf32>
      %c72 = arith.constant 72 : index
      %c0_30 = arith.constant 0 : index
      %44 = vector.load %arg8[%c72, %c0_30] : memref<216x1024xf32, #tpu.memory_space<vmem>>, vector<8x1024xf32>
      tpu.vector_store %arg8[%c72, %c0_30], %43 {strides = array<i32>} : memref<216x1024xf32, #tpu.memory_space<vmem>>, vector<8x1024xf32>,
      %45 = vector.extract_strided_slice %24 {offsets = [0, 101], sizes = [8, 1024], strides = [1, 1]} : vector<8x1280xf32> to vector<8x1024xf32>
      %c80 = arith.constant 80 : index
      %c0_31 = arith.constant 0 : index
      %46 = vector.load %arg8[%c80, %c0_31] : memref<216x1024xf32, #tpu.memory_space<vmem>>, vector<8x1024xf32>
      tpu.vector_store %arg8[%c80, %c0_31], %45 {strides = array<i32>} : memref<216x1024xf32, #tpu.memory_space<vmem>>, vector<8x1024xf32>,
      %47 = vector.extract_strided_slice %24 {offsets = [0, 102], sizes = [8, 1024], strides = [1, 1]} : vector<8x1280xf32> to vector<8x1024xf32>
      %c88 = arith.constant 88 : index
      %c0_32 = arith.constant 0 : index
      %48 = vector.load %arg8[%c88, %c0_32] : memref<216x1024xf32, #tpu.memory_space<vmem>>, vector<8x1024xf32>
      tpu.vector_store %arg8[%c88, %c0_32], %47 {strides = array<i32>} : memref<216x1024xf32, #tpu.memory_space<vmem>>, vector<8x1024xf32>,
      %49 = vector.extract_strided_slice %24 {offsets = [0, 110], sizes = [8, 1024], strides = [1, 1]} : vector<8x1280xf32> to vector<8x1024xf32>
      %c96 = arith.constant 96 : index
      %c0_33 = arith.constant 0 : index
      %50 = vector.load %arg8[%c96, %c0_33] : memref<216x1024xf32, #tpu.memory_space<vmem>>, vector<8x1024xf32>
      tpu.vector_store %arg8[%c96, %c0_33], %49 {strides = array<i32>} : memref<216x1024xf32, #tpu.memory_space<vmem>>, vector<8x1024xf32>,
      %51 = vector.extract_strided_slice %24 {offsets = [0, 111], sizes = [8, 1024], strides = [1, 1]} : vector<8x1280xf32> to vector<8x1024xf32>
      %c104 = arith.constant 104 : index
      %c0_34 = arith.constant 0 : index
      %52 = vector.load %arg8[%c104, %c0_34] : memref<216x1024xf32, #tpu.memory_space<vmem>>, vector<8x1024xf32>
      tpu.vector_store %arg8[%c104, %c0_34], %51 {strides = array<i32>} : memref<216x1024xf32, #tpu.memory_space<vmem>>, vector<8x1024xf32>,
      %53 = vector.extract_strided_slice %24 {offsets = [0, 112], sizes = [8, 1024], strides = [1, 1]} : vector<8x1280xf32> to vector<8x1024xf32>
      %c112 = arith.constant 112 : index
      %c0_35 = arith.constant 0 : index
      %54 = vector.load %arg8[%c112, %c0_35] : memref<216x1024xf32, #tpu.memory_space<vmem>>, vector<8x1024xf32>
      tpu.vector_store %arg8[%c112, %c0_35], %53 {strides = array<i32>} : memref<216x1024xf32, #tpu.memory_space<vmem>>, vector<8x1024xf32>,
      %55 = vector.extract_strided_slice %24 {offsets = [0, 120], sizes = [8, 1024], strides = [1, 1]} : vector<8x1280xf32> to vector<8x1024xf32>
      %c120 = arith.constant 120 : index
      %c0_36 = arith.constant 0 : index
      %56 = vector.load %arg8[%c120, %c0_36] : memref<216x1024xf32, #tpu.memory_space<vmem>>, vector<8x1024xf32>
      tpu.vector_store %arg8[%c120, %c0_36], %55 {strides = array<i32>} : memref<216x1024xf32, #tpu.memory_space<vmem>>, vector<8x1024xf32>,
      %57 = vector.extract_strided_slice %24 {offsets = [0, 121], sizes = [8, 1024], strides = [1, 1]} : vector<8x1280xf32> to vector<8x1024xf32>
      %c128 = arith.constant 128 : index
      %c0_37 = arith.constant 0 : index
      %58 = vector.load %arg8[%c128, %c0_37] : memref<216x1024xf32, #tpu.memory_space<vmem>>, vector<8x1024xf32>
      tpu.vector_store %arg8[%c128, %c0_37], %57 {strides = array<i32>} : memref<216x1024xf32, #tpu.memory_space<vmem>>, vector<8x1024xf32>,
      %59 = vector.extract_strided_slice %24 {offsets = [0, 122], sizes = [8, 1024], strides = [1, 1]} : vector<8x1280xf32> to vector<8x1024xf32>
      %c136 = arith.constant 136 : index
      %c0_38 = arith.constant 0 : index
      %60 = vector.load %arg8[%c136, %c0_38] : memref<216x1024xf32, #tpu.memory_space<vmem>>, vector<8x1024xf32>
      tpu.vector_store %arg8[%c136, %c0_38], %59 {strides = array<i32>} : memref<216x1024xf32, #tpu.memory_space<vmem>>, vector<8x1024xf32>,
      %61 = vector.extract_strided_slice %24 {offsets = [0, 200], sizes = [8, 1024], strides = [1, 1]} : vector<8x1280xf32> to vector<8x1024xf32>
      %c144 = arith.constant 144 : index
      %c0_39 = arith.constant 0 : index
      %62 = vector.load %arg8[%c144, %c0_39] : memref<216x1024xf32, #tpu.memory_space<vmem>>, vector<8x1024xf32>
      tpu.vector_store %arg8[%c144, %c0_39], %61 {strides = array<i32>} : memref<216x1024xf32, #tpu.memory_space<vmem>>, vector<8x1024xf32>,
      %63 = vector.extract_strided_slice %24 {offsets = [0, 201], sizes = [8, 1024], strides = [1, 1]} : vector<8x1280xf32> to vector<8x1024xf32>
      %c152 = arith.constant 152 : index
      %c0_40 = arith.constant 0 : index
      %64 = vector.load %arg8[%c152, %c0_40] : memref<216x1024xf32, #tpu.memory_space<vmem>>, vector<8x1024xf32>
      tpu.vector_store %arg8[%c152, %c0_40], %63 {strides = array<i32>} : memref<216x1024xf32, #tpu.memory_space<vmem>>, vector<8x1024xf32>,
      %65 = vector.extract_strided_slice %24 {offsets = [0, 202], sizes = [8, 1024], strides = [1, 1]} : vector<8x1280xf32> to vector<8x1024xf32>
      %c160 = arith.constant 160 : index
      %c0_41 = arith.constant 0 : index
      %66 = vector.load %arg8[%c160, %c0_41] : memref<216x1024xf32, #tpu.memory_space<vmem>>, vector<8x1024xf32>
      tpu.vector_store %arg8[%c160, %c0_41], %65 {strides = array<i32>} : memref<216x1024xf32, #tpu.memory_space<vmem>>, vector<8x1024xf32>,
      %67 = vector.extract_strided_slice %24 {offsets = [0, 210], sizes = [8, 1024], strides = [1, 1]} : vector<8x1280xf32> to vector<8x1024xf32>
      %c168 = arith.constant 168 : index
      %c0_42 = arith.constant 0 : index
      %68 = vector.load %arg8[%c168, %c0_42] : memref<216x1024xf32, #tpu.memory_space<vmem>>, vector<8x1024xf32>
      tpu.vector_store %arg8[%c168, %c0_42], %67 {strides = array<i32>} : memref<216x1024xf32, #tpu.memory_space<vmem>>, vector<8x1024xf32>,
      %69 = vector.extract_strided_slice %24 {offsets = [0, 211], sizes = [8, 1024], strides = [1, 1]} : vector<8x1280xf32> to vector<8x1024xf32>
      %c176 = arith.constant 176 : index
      %c0_43 = arith.constant 0 : index
      %70 = vector.load %arg8[%c176, %c0_43] : memref<216x1024xf32, #tpu.memory_space<vmem>>, vector<8x1024xf32>
      tpu.vector_store %arg8[%c176, %c0_43], %69 {strides = array<i32>} : memref<216x1024xf32, #tpu.memory_space<vmem>>, vector<8x1024xf32>,
      %71 = vector.extract_strided_slice %24 {offsets = [0, 212], sizes = [8, 1024], strides = [1, 1]} : vector<8x1280xf32> to vector<8x1024xf32>
      %c184 = arith.constant 184 : index
      %c0_44 = arith.constant 0 : index
      %72 = vector.load %arg8[%c184, %c0_44] : memref<216x1024xf32, #tpu.memory_space<vmem>>, vector<8x1024xf32>
      tpu.vector_store %arg8[%c184, %c0_44], %71 {strides = array<i32>} : memref<216x1024xf32, #tpu.memory_space<vmem>>, vector<8x1024xf32>,
      %73 = vector.extract_strided_slice %24 {offsets = [0, 220], sizes = [8, 1024], strides = [1, 1]} : vector<8x1280xf32> to vector<8x1024xf32>
      %c192 = arith.constant 192 : index
      %c0_45 = arith.constant 0 : index
      %74 = vector.load %arg8[%c192, %c0_45] : memref<216x1024xf32, #tpu.memory_space<vmem>>, vector<8x1024xf32>
      tpu.vector_store %arg8[%c192, %c0_45], %73 {strides = array<i32>} : memref<216x1024xf32, #tpu.memory_space<vmem>>, vector<8x1024xf32>,
      %75 = vector.extract_strided_slice %24 {offsets = [0, 221], sizes = [8, 1024], strides = [1, 1]} : vector<8x1280xf32> to vector<8x1024xf32>
      %c200 = arith.constant 200 : index
      %c0_46 = arith.constant 0 : index
      %76 = vector.load %arg8[%c200, %c0_46] : memref<216x1024xf32, #tpu.memory_space<vmem>>, vector<8x1024xf32>
      tpu.vector_store %arg8[%c200, %c0_46], %75 {strides = array<i32>} : memref<216x1024xf32, #tpu.memory_space<vmem>>, vector<8x1024xf32>,
      %77 = vector.extract_strided_slice %24 {offsets = [0, 222], sizes = [8, 1024], strides = [1, 1]} : vector<8x1280xf32> to vector<8x1024xf32>
      %c208 = arith.constant 208 : index
      %c0_47 = arith.constant 0 : index
      %78 = vector.load %arg8[%c208, %c0_47] : memref<216x1024xf32, #tpu.memory_space<vmem>>, vector<8x1024xf32>
      tpu.vector_store %arg8[%c208, %c0_47], %77 {strides = array<i32>} : memref<216x1024xf32, #tpu.memory_space<vmem>>, vector<8x1024xf32>,
    } else {
    }
    %c0 = arith.constant 0 : index
    %c0_1 = arith.constant 0 : index
    %3 = vector.load %arg3[%c0, %c0_1] : memref<8x216xf32, #tpu.memory_space<vmem>>, vector<8x216xf32>
    %c0_2 = arith.constant 0 : index
    %c0_3 = arith.constant 0 : index
    %4 = vector.load %arg8[%c0_2, %c0_3] : memref<216x1024xf32, #tpu.memory_space<vmem>>, vector<216x1024xf32>
    %cst = arith.constant dense<0.000000e+00> : vector<8x1024xf32>
    %5 = tpu.matmul %3, %4, %cst {dimension_numbers = #tpu.dot_dimension_numbers<[1], [0], [0], [1], [0, 0, 1, 1], [], []>} : vector<8x216xf32>, vector<216x1024xf32>, vector<8x1024xf32> -> vector<8x1024xf32>
    %c0_4 = arith.constant 0 : index
    %c0_5 = arith.constant 0 : index
    %c0_6 = arith.constant 0 : index
    %6 = vector.load %arg5[%c0_4, %c0_5, %c0_6] : memref<1x8x1024xf32, #tpu.memory_space<vmem>>, vector<1x8x1024xf32>
    %7 = vector.shape_cast %6 : vector<1x8x1024xf32> to vector<8x1024xf32>
    %8 = vector.shape_cast %5 : vector<8x1024xf32> to vector<1x8x1024xf32>
    tpu.vector_store %arg5[%c0_4, %c0_5, %c0_6], %8 {strides = array<i32>} : memref<1x8x1024xf32, #tpu.memory_space<vmem>>, vector<1x8x1024xf32>,
    %c0_7 = arith.constant 0 : index
    %c0_8 = arith.constant 0 : index
    %9 = vector.load %arg4[%c0_7, %c0_8] : memref<1x1024xf32, #tpu.memory_space<vmem>>, vector<1x1024xf32>
    %10 = vector.broadcast %9 : vector<1x1024xf32> to vector<8x1024xf32>
    %11 = arith.mulf %5, %10 : vector<8x1024xf32>
    %cst_9 = arith.constant dense<0.000000e+00> : vector<8xf32>
    %12 = vector.multi_reduction <add>, %11, %cst_9 [1] : vector<8x1024xf32> to vector<8xf32>
    %13 = vector.shape_cast %12 : vector<8xf32> to vector<8x1xf32>
    %c0_10 = arith.constant 0 : index
    %c0_11 = arith.constant 0 : index
    %c0_12 = arith.constant 0 : index
    %14 = vector.load %arg6[%c0_10, %c0_11, %c0_12] : memref<1x8x1xf32, #tpu.memory_space<vmem>>, vector<1x8x1xf32>
    %15 = vector.shape_cast %14 : vector<1x8x1xf32> to vector<8x1xf32>
    %16 = vector.shape_cast %13 : vector<8x1xf32> to vector<1x8x1xf32>
    tpu.vector_store %arg6[%c0_10, %c0_11, %c0_12], %16 {strides = array<i32>} : memref<1x8x1xf32, #tpu.memory_space<vmem>>, vector<1x8x1xf32>,
    %17 = arith.mulf %11, %5 : vector<8x1024xf32>
    %cst_13 = arith.constant dense<0.000000e+00> : vector<8xf32>
    %18 = vector.multi_reduction <add>, %17, %cst_13 [1] : vector<8x1024xf32> to vector<8xf32>
    %19 = vector.shape_cast %18 : vector<8xf32> to vector<8x1xf32>
    %c0_14 = arith.constant 0 : index
    %c0_15 = arith.constant 0 : index
    %c0_16 = arith.constant 0 : index
    %20 = vector.load %arg7[%c0_14, %c0_15, %c0_16] : memref<1x8x1xf32, #tpu.memory_space<vmem>>, vector<1x8x1xf32>
    %21 = vector.shape_cast %20 : vector<1x8x1xf32> to vector<8x1xf32>
    %22 = vector.shape_cast %19 : vector<8x1xf32> to vector<1x8x1xf32>
    tpu.vector_store %arg7[%c0_14, %c0_15, %c0_16], %22 {strides = array<i32>} : memref<1x8x1xf32, #tpu.memory_space<vmem>>, vector<1x8x1xf32>,
    return
  }
  func.func @transform_0(%arg0: i32, %arg1: i32) -> (i32, i32, i32) {
    %c0_i32 = arith.constant 0 : i32
    %c0_i32_0 = arith.constant 0 : i32
    %c0_i32_1 = arith.constant 0 : i32
    return %arg0, %c0_i32, %c0_i32_0 : i32, i32, i32
  }
  func.func @transform_1(%arg0: i32, %arg1: i32) -> (i32, i32) {
    %c0_i32 = arith.constant 0 : i32
    %c0_i32_0 = arith.constant 0 : i32
    return %arg1, %c0_i32 : i32, i32
  }
  func.func @transform_2(%arg0: i32, %arg1: i32) -> (i32, i32) {
    %c0_i32 = arith.constant 0 : i32
    %c0_i32_0 = arith.constant 0 : i32
    %c0_i32_1 = arith.constant 0 : i32
    return %c0_i32, %c0_i32_0 : i32, i32
  }
  func.func @transform_3(%arg0: i32, %arg1: i32) -> (i32, i32, i32) {
    %c0_i32 = arith.constant 0 : i32
    %c0_i32_0 = arith.constant 0 : i32
    return %arg0, %arg1, %c0_i32 : i32, i32, i32
  }
  func.func @transform_4(%arg0: i32, %arg1: i32) -> (i32, i32, i32) {
    %c0_i32 = arith.constant 0 : i32
    %c0_i32_0 = arith.constant 0 : i32
    return %arg0, %arg1, %c0_i32 : i32, i32, i32
  }
  func.func @transform_5(%arg0: i32, %arg1: i32) -> (i32, i32, i32) {
    %c0_i32 = arith.constant 0 : i32
    %c0_i32_0 = arith.constant 0 : i32
    return %arg0, %arg1, %c0_i32 : i32, i32, i32
  }
}

</mosaic_0001>

<bundles_post_ra>
// kernel: cb_forward.1
= control target key start
LH: loop header
LB: loop body
LE: loop exit
PB: predicated region body
PF: predicated region fallthrough
CT: control target
= control target key end

     0   :  { %s3091_s18 = smov 0   ;;  %s3093_s19 = smov 0   ;;  %s3966_s0 = inlined_call_operand.vmem [shape: f32[2,8,1280], index: 0, kind: input, shape index: {}]   ;;  %s3967_s1 = inlined_call_operand.vmem [shape: f32[8,216], index: 1, kind: input, shape index: {}]   ;;  %s3968_s2 = inlined_call_operand.vmem [shape: f32[1,1024], index: 2, kind: input, shape index: {}]   ;;  %s3969_s3 = inlined_call_operand.vmem [shape: f32[2,8,1024], index: 3, kind: output, shape index: {0}]   ;;  %s3970_s4 = inlined_call_operand.vmem [shape: f32[2,8,1], index: 4, kind: output, shape index: {1}]   ;;  %s3971_s5 = inlined_call_operand.vmem [shape: f32[2,8,1], index: 5, kind: output, shape index: {2}]  }
   0x1   :  { %s3095_s20 = smov 0  }
   0x2 LB: > { %s28_s21 = sadd.s32 1, %s3029_s19  ;;  %p2233_p0 = scmp.ge.s32.totalorder %s3033_s20, 1  ;;  %s3033_s20 = sphi %s3095_s20, %s16_s20   ;;  %s3029_s19 = sphi %s3093_s19, %s4088_s19   ;;  %s3025_s18 = sphi %s3091_s18, %s4087_s18  }
   0x3   : > { %p30_p1 = scmp.ge.s32.totalorder %s28_s21, 2  ;;  %p220_p2 = scmp.lt.s32.totalorder %s3033_s20, 3 }
   0x5   : > { %s4090_s21 = smov (%p30_p1, %s28_s21), 0  ;;  %p221_p3 = pnand %p2233_p0, %p220_p2 }
   0x7   : > { %224 = sbr.rel (%p221_p3) target bundleno = 769 (0x301), region = 32 }
   0xe   : > { %p271_p4 = scmp.lt.s32.totalorder %s3025_s18, 1  ;;  %s3035_s26 = smov 127   ;;  %vm353_vm0 = vcmask 1039360   ;;  %vm439_vm1 = vcmask 965632   ;;  %vm396_vm2 = vcmask 1031168   ;;  %vm482_vm3 = vcmask 957440  }
   0xf   : > { %s3036_s27 = smov 126   ;;  %s3037_s28 = smov 118   ;;  %vm525_vm4 = vcmask 949248   ;;  %vm1672_vm5 = vcmask 719872   ;;  %vm568_vm6 = vcmask 883712   ;;  %vm611_vm7 = vcmask 875520  }
  0x10   : > { %s4092_s18 = smov (!%p271_p4, %s3025_s18), 1  ;;  %s3038_s29 = smov 117   ;;  %vm654_vm8 = vcmask 867328   ;;  %vm697_vm9 = vcmask 228352   ;;  %vm740_vm10 = vcmask 220160   ;;  %vm783_vm11 = vcmask 211968  }
  0x11   : > { %s2454_s22 = smul.u32 80, %s4092_s18  ;;  %s3039_s30 = smov 116   ;;  %vm3989_vm12 = vcmask 146432   ;;  %vm3990_vm13 = vcmask 138240   ;;  %vm3997_vm14 = vcmask 130048   ;;  %vm3998_vm15 = vcmask 64512  }
  0x12   : > { %s3040_s6 = smov 108   ;;  %s3041_s7 = smov 107  }
  0x13   : > { %s3115_s25 = scalar_lea.vmem %s3966_s0, %s2454_s22  ;;  %s3042_s8 = smov 106  }
  0x14   : > { %v3118_v0 = vld [vmem:[%s3115_s25 + $0x20] sm:$0xff]  ;;  %v3121_v1 = vld [vmem:[%s3115_s25 + $0x28] sm:$0xff]  ;;  %v314_v5 = vld [vmem:[%s3115_s25 + $0x30] sm:$0xff]  ;;  %s3043_s9 = smov 28   ;;  %s3044_s10 = smov 27  }
  0x15   : > { %v3124_v2 = vld [vmem:[%s3115_s25] sm:$0xff]  ;;  %v3128_v3 = vpack.i.bf16 %v3121_v1, %v3118_v0  ;;  %v3131_v4 = vld [vmem:[%s3115_s25 + $0x8] sm:$0xff]  ;;  %v315_v6 = vld [vmem:[%s3115_s25 + $0x38] sm:$0xff]  ;;  %s3045_s11 = smov 26   ;;  %s3046_s12 = smov 18  }
  0x16   : > { %v2505_v7 = vpack.i.bf16 %v3131_v4, %v3124_v2  ;;  %v3138_v8 = vld [vmem:[%s3115_s25 + $0x10] sm:$0xff]  ;;  %v3141_v9 = vld [vmem:[%s3115_s25 + $0x18] sm:$0xff]  ;;  %v3144_v10 = vpack.i.bf16 %v315_v6, %v314_v5  ;;  %v3153_v12 = vld [vmem:[%s3115_s25 + $0x40] sm:$0xff]  ;;  %s3047_s13 = smov 17   ;;  %s3048_s14 = smov 16   ;;  %v3227_v15 = vpack.i.bf16 %v3118_v0, %v3131_v4 }
  0x17   : > { %2516 = vrot.lane.b32.xlu1 %v3128_v3, %s3035_s26  ;;  %v3148_v11 = vpack.i.bf16 %v3141_v9, %v3138_v8  ;;  %v2535_v13 = vpack.i.bf16 %v3138_v8, %v3131_v4  ;;  %v2540_v14 = vpack.i.bf16 %v3141_v9, %v3124_v2  ;;  %s3049_s15 = smov 8   ;;  %s3050_s16 = smov 7  }
  0x18   : > { %2506 = vrot.lane.b32.xlu0 %v2505_v7, %s3035_s26  ;;  %s3051_s17 = smov 6   ;;  %s3972_s22 = smov 56  }
  0x19   : > { %s3982_s23 = smov 55   ;;  %s3974_s24 = smov 54  }
  0x1b   : > { %2521 = vrot.lane.b32.xlu1 %v3144_v10, %s3035_s26 }
  0x1c   : > { %2511 = vrot.lane.b32.xlu0 %v3148_v11, %s3035_s26 }
  0x1f   : > { %2526 = vrot.lane.b32.xlu1 %v2505_v7, %s3036_s27 }
  0x20   : > { %351 = vrot.lane.b32.xlu0 %v3153_v12, %s3035_s26  ;;  %s3980_s26 = smov 46  }
  0x23   : > { %2536 = vrot.lane.b32.xlu1 %v2535_v13, %s3037_s28 }
  0x24   : > { %2531 = vrot.lane.b32.xlu0 %v3148_v11, %s3036_s27 }
  0x27   : > { %2546 = vrot.lane.b32.xlu1 %v3128_v3, %s3036_s27 }
  0x28   : > { %2541 = vrot.lane.b32.xlu0 %v2540_v14, %s3037_s28 }
  0x2b   : > { %2556 = vrot.lane.b32.xlu1 %v2535_v13, %s3038_s29 }
  0x2c   : > { %2551 = vrot.lane.b32.xlu0 %v3128_v3, %s3037_s28 }
  0x2f   : > { %2566 = vrot.lane.b32.xlu1 %v2540_v14, %s3038_s29 }
  0x30   : > { %2561 = vrot.lane.b32.xlu0 %v2535_v13, %s3039_s30 }
  0x33   : > { %2576 = vrot.lane.b32.xlu1 %v3128_v3, %s3038_s29 }
  0x34   : > { %2571 = vrot.lane.b32.xlu0 %v2540_v14, %s3039_s30 }
  0x37   : > { %2586 = vrot.lane.b32.xlu1 %v2535_v13, %s3040_s6 }
  0x38   : > { %2581 = vrot.lane.b32.xlu0 %v3128_v3, %s3039_s30 }
  0x3b   : > { %2596 = vrot.lane.b32.xlu1 %v2540_v14, %s3040_s6 }
  0x3c   : > { %2591 = vrot.lane.b32.xlu0 %v2535_v13, %s3041_s7 }
  0x3f   : > { %2606 = vrot.lane.b32.xlu1 %v3128_v3, %s3040_s6 }
  0x40   : > { %2601 = vrot.lane.b32.xlu0 %v2540_v14, %s3041_s7 }
  0x43   : > { %2616 = vrot.lane.b32.xlu1 %v2535_v13, %s3042_s8 }
  0x44   : > { %2611 = vrot.lane.b32.xlu0 %v3128_v3, %s3041_s7 }
  0x47   : > { %2626 = vrot.lane.b32.xlu1 %v2540_v14, %s3042_s8 }
  0x48   : > { %2621 = vrot.lane.b32.xlu0 %v2535_v13, %s3043_s9 }
  0x4b   : > { %2636 = vrot.lane.b32.xlu1 %v3128_v3, %s3042_s8 }
  0x4c   : > { %2631 = vrot.lane.b32.xlu0 %v2540_v14, %s3043_s9 }
  0x4f   : > { %2646 = vrot.lane.b32.xlu1 %v2535_v13, %s3044_s10 }
  0x50   : > { %2641 = vrot.lane.b32.xlu0 %v3128_v3, %s3043_s9 }
  0x53   : > { %2656 = vrot.lane.b32.xlu1 %v2540_v14, %s3044_s10 }
  0x54   : > { %2651 = vrot.lane.b32.xlu0 %v2535_v13, %s3045_s11 }
  0x57   : > { %2666 = vrot.lane.b32.xlu1 %v3128_v3, %s3044_s10 }
  0x58   : > { %2661 = vrot.lane.b32.xlu0 %v2540_v14, %s3045_s11 }
  0x5b   : > { %2676 = vrot.lane.b32.xlu1 %v2535_v13, %s3046_s12 }
  0x5c   : > { %2671 = vrot.lane.b32.xlu0 %v3128_v3, %s3045_s11 }
  0x5f   : > { %2686 = vrot.lane.b32.xlu1 %v2540_v14, %s3046_s12 }
  0x60   : > { %2681 = vrot.lane.b32.xlu0 %v2535_v13, %s3047_s13 }
  0x63   : > { %2696 = vrot.lane.b32.xlu1 %v3128_v3, %s3046_s12 }
  0x64   : > { %2691 = vrot.lane.b32.xlu0 %v2540_v14, %s3047_s13 }
  0x67   : > { %2706 = vrot.lane.b32.xlu1 %v2535_v13, %s3048_s14 }
  0x68   : > { %2701 = vrot.lane.b32.xlu0 %v3128_v3, %s3047_s13 }
  0x6b   : > { %2716 = vrot.lane.b32.xlu1 %v2540_v14, %s3048_s14 }
  0x6c   : > { %2711 = vrot.lane.b32.xlu0 %v2535_v13, %s3049_s15 }
  0x6f   : > { %2726 = vrot.lane.b32.xlu1 %v3128_v3, %s3048_s14 }
  0x70   : > { %2721 = vrot.lane.b32.xlu0 %v2540_v14, %s3049_s15 }
  0x73   : > { %2736 = vrot.lane.b32.xlu1 %v2535_v13, %s3050_s16 }
  0x74   : > { %2731 = vrot.lane.b32.xlu0 %v3128_v3, %s3049_s15 }
  0x77   : > { %2746 = vrot.lane.b32.xlu1 %v2540_v14, %s3050_s16 }
  0x78   : > { %2741 = vrot.lane.b32.xlu0 %v2535_v13, %s3051_s17 }
  0x7b   : > { %2756 = vrot.lane.b32.xlu1 %v3128_v3, %s3050_s16 }
  0x7c   : > { %2751 = vrot.lane.b32.xlu0 %v2540_v14, %s3051_s17 }
  0x7f   : > { %2766 = vrot.lane.b32.xlu1 %v3148_v11, %s3972_s22 }
  0x80   : > { %2761 = vrot.lane.b32.xlu0 %v3128_v3, %s3051_s17 }
  0x83   : > { %2776 = vrot.lane.b32.xlu1 %v3227_v15, %s3972_s22 }
  0x84   : > { %2771 = vrot.lane.b32.xlu0 %v3148_v11, %s3982_s23 }
  0x87   : > { %1075 = vrot.lane.b32.xlu1 %v3121_v1, %s3972_s22  ;;  %s3976_s22 = smov 45  }
  0x88   : > { %2781 = vrot.lane.b32.xlu0 %v3227_v15, %s3982_s23 }
  0x89   : > { %v3239_v16 = vpop.permute.xlu1 %2516 }
  0x8a   : > { %v4006_v17 = vunpack.i.h.bf16 %v3239_v16  ;;  %v2518_v18 = vunpack.i.l.bf16 %v3239_v16  ;;  %v2507_v19 = vpop.permute.xlu0 %2506 }
  0x8b   : > { %2786 = vrot.lane.b32.xlu1 %v3148_v11, %s3974_s24  ;;  %v2509_v21 = vunpack.i.h.bf16 %v2507_v19  ;;  %v2508_v22 = vunpack.i.l.bf16 %v2507_v19 }
  0x8c   : > { %v3248_v20 = vsel %vm353_vm0, %v2518_v18, %v4006_v17  ;;  %1118 = vrot.lane.b32.xlu0 %v3121_v1, %s3982_s23  ;;  %s3060_s23 = smov 34  }
  0x8d   : > { %v3252_v23 = vpop.permute.xlu1 %2521  ;;  %v354_v27 = vsel %vm353_vm0, %v2508_v22, %v2509_v21 }
  0x8e   : > { %v2512_v24 = vpop.permute.xlu0 %2511  ;;  %v2248_v35 = vpack.c.bf16 %v354_v27, %v3124_v2 }
  0x8f   : > { %v2514_v25 = vunpack.i.h.bf16 %v2512_v24  ;;  %v2513_v26 = vunpack.i.l.bf16 %v2512_v24  ;;  %2796 = vrot.lane.b32.xlu1 %v3227_v15, %s3974_s24 }
  0x90   : > { %2791 = vrot.lane.b32.xlu0 %v3148_v11, %s3980_s26 }
  0x91   : > { %v2527_v28 = vpop.permute.xlu1 %2526  ;;  %v355_v29 = vsel %vm353_vm0, %v2509_v21, %v2513_v26  ;;  %v357_v30 = vsel %vm353_vm0, %v2514_v25, %v2518_v18  ;;  %v356_v31 = vsel %vm353_vm0, %v2513_v26, %v2514_v25 }
  0x92   : > { %v3262_v32 = vpop.permute.xlu0 %351  ;;  %v2246_v33 = vpack.c.bf16 %v355_v29, %v3131_v4  ;;  %v2298_v34 = vpack.c.bf16 %v357_v30, %v3141_v9  ;;  %v2300_v36 = vpack.c.bf16 %v356_v31, %v3138_v8  ;;  %v2529_v41 = vunpack.i.h.bf16 %v2527_v28 }
  0x93   : > { %1161 = vrot.lane.b32.xlu1 %v3121_v1, %s3974_s24  ;;  %v2528_v44 = vunpack.i.l.bf16 %v2527_v28  ;;  %s3978_s24 = smov 44  }
  0x94   : > { %2801 = vrot.lane.b32.xlu0 %v3227_v15, %s3980_s26  ;;  %2247 = vmatprep.subr.bf16.mxu0 %v2246_v33 }
  0x95   : > { %2299 = vmatprep.subr.bf16.mxu1 %v2298_v34  ;;  %2249 = vmatpush1.bf16.msra.mxu0 %v2248_v35  ;;  %v2537_v37 = vpop.permute.xlu1 %2536  ;;  %v397_v54 = vsel %vm396_vm2, %v2528_v44, %v2529_v41 }
  0x96   : > { %2301 = vmatpush1.bf16.msra.mxu1 %v2300_v36  ;;  %v2539_v38 = vunpack.i.h.bf16 %v2537_v37  ;;  %v2538_v39 = vunpack.i.l.bf16 %v2537_v37  ;;  %v2532_v40 = vpop.permute.xlu0 %2531 }
  0x97   : > { %v2533_v42 = vunpack.i.l.bf16 %v2532_v40  ;;  %2806 = vrot.lane.b32.xlu1 %v3148_v11, %s3976_s22  ;;  %v2534_v56 = vunpack.i.h.bf16 %v2532_v40 }
  0x98   : > { %1204 = vrot.lane.b32.xlu0 %v3121_v1, %s3980_s26  ;;  %v441_v43 = vsel %vm439_vm1, %v2538_v39, %v2539_v38 }
  0x99   : > { %v3277_v45 = vpop.permute.xlu1 %2546  ;;  %v398_v46 = vsel %vm396_vm2, %v2529_v41, %v2533_v42  ;;  %v399_v18 = vsel %vm396_vm2, %v2533_v42, %v2534_v56 }
  0x9a   : > { %v2542_v47 = vpop.permute.xlu0 %2541  ;;  %v2250_v48 = vpack.c.bf16 %v441_v43, %v398_v46  ;;  %v4004_v50 = vunpack.i.h.bf16 %v3277_v45  ;;  %v2548_v51 = vunpack.i.l.bf16 %v3277_v45 }
  0x9b   : > { %v2543_v49 = vunpack.i.l.bf16 %v2542_v47  ;;  %2816 = vrot.lane.b32.xlu1 %v3227_v15, %s3976_s22  ;;  %v2544_v52 = vunpack.i.h.bf16 %v2542_v47 }
  0x9c   : > { %2811 = vrot.lane.b32.xlu0 %v3148_v11, %s3978_s24  ;;  %2251 = vmatprep.subr.bf16.mxu0 %v2250_v48  ;;  %v3299_v61 = vsel %vm396_vm2, %v2548_v51, %v4004_v50  ;;  %v400_v62 = vsel %vm396_vm2, %v2534_v56, %v2548_v51 }
  0x9d   : > { %v3286_v53 = vpop.permute.xlu1 %2556  ;;  %v440_v55 = vsel %vm439_vm1, %v2543_v49, %v2538_v39  ;;  %v442_v63 = vsel %vm439_vm1, %v2539_v38, %v2544_v52  ;;  %v3337_v39 = vld [vmem:[%s3967_s1 + $0x8] sm:$0xff] }
  0x9e   : > { %v3290_v57 = vpop.permute.xlu0 %2551  ;;  %v2252_v58 = vpack.c.bf16 %v440_v55, %v397_v54  ;;  %v2559_v2 = vunpack.i.h.bf16 %v3286_v53  ;;  %v2558_v3 = vunpack.i.l.bf16 %v3286_v53  ;;  %v2304_v24 = vpack.c.bf16 %v442_v63, %v399_v18  ;;  %2239 = vmatprep.mubr.msk.f32.mxu0 %vm1672_vm5, %v3337_v39  ;;  %2240 = vmatprep.mubr.msk.f32.mxu1 %vm1672_vm5, %v3337_v39 }
  0x9f   : > { %v4005_v59 = vunpack.i.h.bf16 %v3290_v57  ;;  %v2553_v60 = vunpack.i.l.bf16 %v3290_v57  ;;  %1247 = vrot.lane.b32.xlu1 %v3121_v1, %s3976_s22  ;;  %s3058_s22 = smov 36  }
  0xa0   : > { %2821 = vrot.lane.b32.xlu0 %v3227_v15, %s3978_s24  ;;  %2253 = vmatpush1.bf16.msra.mxu0 %v2252_v58  ;;  %v484_v27 = vsel %vm482_vm3, %v2558_v3, %v2559_v2 }
  0xa1   : > { %v3310_v5 = vsel %vm439_vm1, %v2553_v60, %v4005_v59  ;;  %v2567_v6 = vpop.permute.xlu1 %2566  ;;  %v443_v7 = vsel %vm439_vm1, %v2544_v52, %v2553_v60 }
  0xa2   : > { %v2562_v13 = vpop.permute.xlu0 %2561  ;;  %v2302_v14 = vpack.c.bf16 %v443_v7, %v400_v62  ;;  %v2568_v25 = vunpack.i.l.bf16 %v2567_v6  ;;  %v2569_v40 = vunpack.i.h.bf16 %v2567_v6 }
  0xa3   : > { %v2564_v21 = vunpack.i.h.bf16 %v2562_v13  ;;  %v2563_v22 = vunpack.i.l.bf16 %v2562_v13  ;;  %2826 = vrot.lane.b32.xlu1 %v3148_v11, %s3058_s22 }
  0xa4   : > { %1290 = vrot.lane.b32.xlu0 %v3121_v1, %s3978_s24  ;;  %2303 = vmatprep.subr.bf16.mxu1 %v2302_v14  ;;  %s3059_s24 = smov 35   ;;  %v483_v37 = vsel %vm482_vm3, %v2568_v25, %v2558_v3  ;;  %v485_v55 = vsel %vm482_vm3, %v2559_v2, %v2569_v40 }
  0xa5   : > { %2305 = vmatpush1.bf16.msra.mxu1 %v2304_v24  ;;  %v3320_v26 = vpop.permute.xlu1 %2576  ;;  %v527_v28 = vsel %vm525_vm4, %v2563_v22, %v2564_v21 }
  0xa6   : > { %v2572_v29 = vpop.permute.xlu0 %2571  ;;  %v2254_v30 = vpack.c.bf16 %v527_v28, %v484_v27  ;;  %v3996_v33 = vunpack.i.h.bf16 %v3320_v26  ;;  %v2578_v34 = vunpack.i.l.bf16 %v3320_v26 }
  0xa7   : > { %v2573_v31 = vunpack.i.l.bf16 %v2572_v29  ;;  %2836 = vrot.lane.b32.xlu1 %v3227_v15, %s3058_s22  ;;  %v2574_v35 = vunpack.i.h.bf16 %v2572_v29 }
  0xa8   : > { %2831 = vrot.lane.b32.xlu0 %v3148_v11, %s3059_s24  ;;  %2255 = vmatprep.subr.bf16.mxu0 %v2254_v30  ;;  %v3352_v44 = vsel %vm482_vm3, %v2578_v34, %v3996_v33  ;;  %v486_v46 = vsel %vm482_vm3, %v2569_v40, %v2578_v34 }
  0xa9   : > { %v3330_v36 = vpop.permute.xlu1 %2586  ;;  %v526_v38 = vsel %vm525_vm4, %v2573_v31, %v2563_v22  ;;  %v528_v47 = vsel %vm525_vm4, %v2564_v21, %v2574_v35 }
  0xaa   : > { %v3339_v41 = vpop.permute.xlu0 %2581  ;;  %v2256_v42 = vpack.c.bf16 %v526_v38, %v483_v37  ;;  %v2589_v48 = vunpack.i.h.bf16 %v3330_v36  ;;  %v2588_v49 = vunpack.i.l.bf16 %v3330_v36  ;;  %v2308_v62 = vpack.c.bf16 %v528_v47, %v485_v55 }
  0xab   : > { %v4001_v11 = vunpack.i.h.bf16 %v3339_v41  ;;  %v2583_v43 = vunpack.i.l.bf16 %v3339_v41  ;;  %1333 = vrot.lane.b32.xlu1 %v3121_v1, %s3058_s22 }
  0xac   : > { %2841 = vrot.lane.b32.xlu0 %v3227_v15, %s3059_s24  ;;  %2257 = vmatpush1.bf16.msra.mxu0 %v2256_v42  ;;  %v570_v2 = vsel %vm568_vm6, %v2588_v49, %v2589_v48 }
  0xad   : > { %v3363_v51 = vsel %vm525_vm4, %v2583_v43, %v4001_v11  ;;  %v2597_v52 = vpop.permute.xlu1 %2596  ;;  %v529_v53 = vsel %vm525_vm4, %v2574_v35, %v2583_v43 }
  0xae   : > { %v2592_v54 = vpop.permute.xlu0 %2591  ;;  %v2306_v15 = vpack.c.bf16 %v529_v53, %v486_v46  ;;  %v2598_v63 = vunpack.i.l.bf16 %v2597_v52  ;;  %v2599_v27 = vunpack.i.h.bf16 %v2597_v52 }
  0xaf   : > { %v2594_v58 = vunpack.i.h.bf16 %v2592_v54  ;;  %v2593_v60 = vunpack.i.l.bf16 %v2592_v54  ;;  %1413 = vrot.lane.b32.xlu1 %v3138_v8, %s3060_s23 }
  0xb0   : > { %1376 = vrot.lane.b32.xlu0 %v3121_v1, %s3059_s24  ;;  %2307 = vmatprep.subr.bf16.mxu1 %v2306_v15  ;;  %v569_v24 = vsel %vm568_vm6, %v2598_v63, %v2588_v49  ;;  %v571_v46 = vsel %vm568_vm6, %v2589_v48, %v2599_v27 }
  0xb1   : > { %2309 = vmatpush1.bf16.msra.mxu1 %v2308_v62  ;;  %v3373_v3 = vpop.permute.xlu1 %2606  ;;  %v613_v6 = vsel %vm611_vm7, %v2593_v60, %v2594_v58 }
  0xb2   : > { %v2602_v7 = vpop.permute.xlu0 %2601  ;;  %v2258_v13 = vpack.c.bf16 %v613_v6, %v570_v2  ;;  %v3994_v8 = vunpack.i.h.bf16 %v3373_v3  ;;  %v2608_v18 = vunpack.i.l.bf16 %v3373_v3 }
  0xb3   : > { %v2603_v14 = vunpack.i.l.bf16 %v2602_v7  ;;  %1411 = vrot.lane.b32.xlu1 %v3131_v4, %s3060_s23  ;;  %v2604_v21 = vunpack.i.h.bf16 %v2602_v7 }
  0xb4   : > { %1415 = vrot.lane.b32.xlu0 %v3141_v9, %s3060_s23  ;;  %2259 = vmatprep.subr.bf16.mxu0 %v2258_v13  ;;  %v3396_v9 = vsel %vm568_vm6, %v2608_v18, %v3994_v8  ;;  %v572_v31 = vsel %vm568_vm6, %v2599_v27, %v2608_v18 }
  0xb5   : > { %v3383_v22 = vpop.permute.xlu1 %2616  ;;  %v612_v25 = vsel %vm611_vm7, %v2603_v14, %v2593_v60  ;;  %v614_v34 = vsel %vm611_vm7, %v2594_v58, %v2604_v21 }
  0xb6   : > { %v3387_v28 = vpop.permute.xlu0 %2611  ;;  %v2260_v29 = vpack.c.bf16 %v612_v25, %v569_v24  ;;  %v2619_v35 = vunpack.i.h.bf16 %v3383_v22  ;;  %v2618_v36 = vunpack.i.l.bf16 %v3383_v22  ;;  %v2312_v53 = vpack.c.bf16 %v614_v34, %v571_v46 }
  0xb7   : > { %v3995_v4 = vunpack.i.h.bf16 %v3387_v28  ;;  %v2613_v30 = vunpack.i.l.bf16 %v3387_v28  ;;  %2851 = vrot.lane.b32.xlu1 %v3144_v10, %s3037_s28 }
  0xb8   : > { %2846 = vrot.lane.b32.xlu0 %v3144_v10, %s3036_s27  ;;  %2261 = vmatpush1.bf16.msra.mxu0 %v2260_v29  ;;  %v656_v48 = vsel %vm654_vm8, %v2618_v36, %v2619_v35 }
  0xb9   : > { %v3407_v37 = vsel %vm611_vm7, %v2613_v30, %v3995_v4  ;;  %v2627_v38 = vpop.permute.xlu1 %2626  ;;  %v615_v40 = vsel %vm611_vm7, %v2604_v21, %v2613_v30 }
  0xba   : > { %v2622_v42 = vpop.permute.xlu0 %2621  ;;  %v2310_v43 = vpack.c.bf16 %v615_v40, %v572_v31  ;;  %v2628_v54 = vunpack.i.l.bf16 %v2627_v38  ;;  %v2629_v13 = vunpack.i.h.bf16 %v2627_v38 }
  0xbb   : > { %v2624_v49 = vunpack.i.h.bf16 %v2622_v42  ;;  %v2623_v52 = vunpack.i.l.bf16 %v2622_v42  ;;  %1419 = vrot.lane.b32.xlu1 %v3121_v1, %s3060_s23 }
  0xbc   : > { %1417 = vrot.lane.b32.xlu0 %v3118_v0, %s3060_s23  ;;  %2311 = vmatprep.subr.bf16.mxu1 %v2310_v43  ;;  %v655_v6 = vsel %vm654_vm8, %v2628_v54, %v2618_v36  ;;  %v657_v42 = vsel %vm654_vm8, %v2619_v35, %v2629_v13 }
  0xbd   : > { %2313 = vmatpush1.bf16.msra.mxu1 %v2312_v53  ;;  %v3417_v15 = vpop.permute.xlu1 %2636  ;;  %v699_v55 = vsel %vm697_vm9, %v2623_v52, %v2624_v49 }
  0xbe   : > { %v2632_v58 = vpop.permute.xlu0 %2631  ;;  %v2262_v60 = vpack.c.bf16 %v699_v55, %v656_v48  ;;  %v3992_v1 = vunpack.i.h.bf16 %v3417_v15  ;;  %v2638_v63 = vunpack.i.l.bf16 %v3417_v15 }
  0xbf   : > { %v2633_v62 = vunpack.i.l.bf16 %v2632_v58  ;;  %437 = vrot.lane.b32.xlu1 %v3153_v12, %s3037_s28  ;;  %v2634_v0 = vunpack.i.h.bf16 %v2632_v58  ;;  %s4015_s28 = smov 56  }
  0xc0   : > { %394 = vrot.lane.b32.xlu0 %v3153_v12, %s3036_s27  ;;  %2263 = vmatprep.subr.bf16.mxu0 %v2262_v60  ;;  %v3440_v24 = vsel %vm654_vm8, %v2638_v63, %v3992_v1  ;;  %v658_v25 = vsel %vm654_vm8, %v2629_v13, %v2638_v63  ;;  %s4014_s27 = smov 55  }
  0xc1   : > { %v3427_v2 = vpop.permute.xlu1 %2646  ;;  %v698_v7 = vsel %vm697_vm9, %v2633_v62, %v2623_v52  ;;  %v700_v27 = vsel %vm697_vm9, %v2624_v49, %v2634_v0 }
  0xc2   : > { %v3431_v14 = vpop.permute.xlu0 %2641  ;;  %v2264_v18 = vpack.c.bf16 %v698_v7, %v655_v6  ;;  %v2649_v29 = vunpack.i.h.bf16 %v3427_v2  ;;  %v2648_v30 = vunpack.i.l.bf16 %v3427_v2  ;;  %v2316_v52 = vpack.c.bf16 %v700_v27, %v657_v42 }
  0xc3   : > { %v3993_v21 = vunpack.i.h.bf16 %v3431_v14  ;;  %v2643_v22 = vunpack.i.l.bf16 %v3431_v14  ;;  %2861 = vrot.lane.b32.xlu1 %v3144_v10, %s3039_s30 }
  0xc4   : > { %2856 = vrot.lane.b32.xlu0 %v3144_v10, %s3038_s29  ;;  %2265 = vmatpush1.bf16.msra.mxu0 %v2264_v18  ;;  %v742_v35 = vsel %vm740_vm10, %v2648_v30, %v2649_v29 }
  0xc5   : > { %v3451_v31 = vsel %vm697_vm9, %v2643_v22, %v3993_v21  ;;  %v2657_v34 = vpop.permute.xlu1 %2656  ;;  %v701_v36 = vsel %vm697_vm9, %v2634_v0, %v2643_v22 }
  0xc6   : > { %v2652_v38 = vpop.permute.xlu0 %2651  ;;  %v2314_v40 = vpack.c.bf16 %v701_v36, %v658_v25  ;;  %v2658_v53 = vunpack.i.l.bf16 %v2657_v34  ;;  %v2659_v13 = vunpack.i.h.bf16 %v2657_v34 }
  0xc7   : > { %v2654_v46 = vunpack.i.h.bf16 %v2652_v38  ;;  %v2653_v49 = vunpack.i.l.bf16 %v2652_v38  ;;  %523 = vrot.lane.b32.xlu1 %v3153_v12, %s3039_s30  ;;  %s4017_s30 = smov 54  }
  0xc8   : > { %480 = vrot.lane.b32.xlu0 %v3153_v12, %s3038_s29  ;;  %2315 = vmatprep.subr.bf16.mxu1 %v2314_v40  ;;  %v741_v6 = vsel %vm740_vm10, %v2658_v53, %v2648_v30  ;;  %s4016_s29 = smov 46  }
  0xc9   : > { %2317 = vmatpush1.bf16.msra.mxu1 %v2316_v52  ;;  %v3461_v54 = vpop.permute.xlu1 %2666  ;;  %v785_v48 = vsel %vm783_vm11, %v2653_v49, %v2654_v46 }
  0xca   : > { %v2662_v55 = vpop.permute.xlu0 %2661  ;;  %v2266_v58 = vpack.c.bf16 %v785_v48, %v742_v35  ;;  %v3986_v62 = vunpack.i.h.bf16 %v3461_v54  ;;  %v2668_v63 = vunpack.i.l.bf16 %v3461_v54  ;;  %v743_v48 = vsel %vm740_vm10, %v2649_v29, %v2659_v13 }
  0xcb   : > { %v2663_v60 = vunpack.i.l.bf16 %v2662_v55  ;;  %2871 = vrot.lane.b32.xlu1 %v3144_v10, %s3041_s7  ;;  %v2664_v0 = vunpack.i.h.bf16 %v2662_v55 }
  0xcc   : > { %2866 = vrot.lane.b32.xlu0 %v3144_v10, %s3040_s6  ;;  %2267 = vmatprep.subr.bf16.mxu0 %v2266_v58  ;;  %v3484_v36 = vsel %vm740_vm10, %v2668_v63, %v3986_v62  ;;  %v744_v30 = vsel %vm740_vm10, %v2659_v13, %v2668_v63 }
  0xcd   : > { %v3471_v2 = vpop.permute.xlu1 %2676  ;;  %v784_v7 = vsel %vm783_vm11, %v2663_v60, %v2653_v49  ;;  %v786_v34 = vsel %vm783_vm11, %v2654_v46, %v2664_v0 }
  0xce   : > { %v3475_v18 = vpop.permute.xlu0 %2671  ;;  %v2268_v22 = vpack.c.bf16 %v784_v7, %v741_v6  ;;  %v2679_v38 = vunpack.i.h.bf16 %v3471_v2  ;;  %v2678_v40 = vunpack.i.l.bf16 %v3471_v2  ;;  %v2320_v60 = vpack.c.bf16 %v786_v34, %v743_v48 }
  0xcf   : > { %v3987_v25 = vunpack.i.h.bf16 %v3475_v18  ;;  %v2673_v27 = vunpack.i.l.bf16 %v3475_v18  ;;  %609 = vrot.lane.b32.xlu1 %v3153_v12, %s3041_s7  ;;  %s4021_s7 = smov 45  }
  0xd0   : > { %566 = vrot.lane.b32.xlu0 %v3153_v12, %s3040_s6  ;;  %2269 = vmatpush1.bf16.msra.mxu0 %v2268_v22  ;;  %v828_v29 = vsel %vm3989_vm12, %v2678_v40, %v2679_v38  ;;  %s4020_s6 = smov 44  }
  0xd1   : > { %v3495_v42 = vsel %vm783_vm11, %v2673_v27, %v3987_v25  ;;  %v2687_v49 = vpop.permute.xlu1 %2686  ;;  %v787_v52 = vsel %vm783_vm11, %v2664_v0, %v2673_v27 }
  0xd2   : > { %v2682_v53 = vpop.permute.xlu0 %2681  ;;  %v2318_v35 = vpack.c.bf16 %v787_v52, %v744_v30  ;;  %v2688_v63 = vunpack.i.l.bf16 %v2687_v49  ;;  %v2689_v48 = vunpack.i.h.bf16 %v2687_v49 }
  0xd3   : > { %v2684_v55 = vunpack.i.h.bf16 %v2682_v53  ;;  %v2683_v58 = vunpack.i.l.bf16 %v2682_v53  ;;  %2881 = vrot.lane.b32.xlu1 %v3144_v10, %s3043_s9 }
  0xd4   : > { %2876 = vrot.lane.b32.xlu0 %v3144_v10, %s3042_s8  ;;  %2319 = vmatprep.subr.bf16.mxu1 %v2318_v35  ;;  %v827_v53 = vsel %vm3989_vm12, %v2688_v63, %v2678_v40 }
  0xd5   : > { %2321 = vmatpush1.bf16.msra.mxu1 %v2320_v60  ;;  %v3505_v0 = vpop.permute.xlu1 %2696  ;;  %v871_v2 = vsel %vm3990_vm13, %v2683_v58, %v2684_v55 }
  0xd6   : > { %v3984_v6 = vunpack.i.h.bf16 %v3505_v0  ;;  %v2698_v7 = vunpack.i.l.bf16 %v3505_v0  ;;  %v2692_v13 = vpop.permute.xlu0 %2691  ;;  %v2270_v22 = vpack.c.bf16 %v871_v2, %v828_v29 }
  0xd7   : > { %v2693_v27 = vunpack.i.l.bf16 %v2692_v13  ;;  %695 = vrot.lane.b32.xlu1 %v3153_v12, %s3043_s9  ;;  %v2694_v34 = vunpack.i.h.bf16 %v2692_v13 }
  0xd8   : > { %v3516_v30 = vsel %vm3989_vm12, %v2698_v7, %v3984_v6  ;;  %652 = vrot.lane.b32.xlu0 %v3153_v12, %s3042_s8  ;;  %2271 = vmatprep.subr.bf16.mxu0 %v2270_v22  ;;  %v830_v13 = vsel %vm3989_vm12, %v2689_v48, %v2698_v7 }
  0xd9   : > { %v3520_v52 = vpop.permute.xlu1 %2706  ;;  %v870_v35 = vsel %vm3990_vm13, %v2693_v27, %v2683_v58  ;;  %v872_v40 = vsel %vm3990_vm13, %v2684_v55, %v2694_v34  ;;  %v829_v55 = vsel %vm3989_vm12, %v2679_v38, %v2689_v48  ;;  %vm4002_vm12 = vcmask 56320  }
  0xda   : > { %v3524_v60 = vpop.permute.xlu0 %2701  ;;  %v2272_v29 = vpack.c.bf16 %v870_v35, %v827_v53  ;;  %v2709_v49 = vunpack.i.h.bf16 %v3520_v52  ;;  %v2708_v58 = vunpack.i.l.bf16 %v3520_v52  ;;  %v2324_v52 = vpack.c.bf16 %v872_v40, %v829_v55 }
  0xdb   : > { %v3985_v2 = vunpack.i.h.bf16 %v3524_v60  ;;  %v2703_v6 = vunpack.i.l.bf16 %v3524_v60  ;;  %2891 = vrot.lane.b32.xlu1 %v3144_v10, %s3045_s11 }
  0xdc   : > { %2886 = vrot.lane.b32.xlu0 %v3144_v10, %s3044_s10  ;;  %2273 = vmatpush1.bf16.msra.mxu0 %v2272_v29 }
  0xdd   : > { %v3539_v63 = vsel %vm3990_vm13, %v2703_v6, %v3985_v2  ;;  %v2717_v22 = vpop.permute.xlu1 %2716  ;;  %v873_v27 = vsel %vm3990_vm13, %v2694_v34, %v2703_v6  ;;  %v914_v34 = vsel %vm3997_vm14, %v2708_v58, %v2709_v49  ;;  %vm4003_vm13 = vcmask 48128  }
  0xde   : > { %v2712_v35 = vpop.permute.xlu0 %2711  ;;  %v2322_v7 = vpack.c.bf16 %v873_v27, %v830_v13  ;;  %v2718_v2 = vunpack.i.l.bf16 %v2717_v22 }
  0xdf   : > { %v2714_v29 = vunpack.i.h.bf16 %v2712_v35  ;;  %v2713_v46 = vunpack.i.l.bf16 %v2712_v35  ;;  %781 = vrot.lane.b32.xlu1 %v3153_v12, %s3045_s11 }
  0xe0   : > { %738 = vrot.lane.b32.xlu0 %v3153_v12, %s3044_s10  ;;  %2323 = vmatprep.subr.bf16.mxu1 %v2322_v7 }
  0xe1   : > { %2325 = vmatpush1.bf16.msra.mxu1 %v2324_v52  ;;  %v3549_v6 = vpop.permute.xlu1 %2726  ;;  %v957_v13 = vsel %vm3998_vm15, %v2713_v46, %v2714_v29  ;;  %v913_v52 = vsel %vm3997_vm14, %v2718_v2, %v2708_v58 }
  0xe2   : > { %v3988_v38 = vunpack.i.h.bf16 %v3549_v6  ;;  %v2728_v48 = vunpack.i.l.bf16 %v3549_v6  ;;  %v2722_v27 = vpop.permute.xlu0 %2721  ;;  %v2274_v35 = vpack.c.bf16 %v957_v13, %v914_v34  ;;  %v2719_v13 = vunpack.i.h.bf16 %v2717_v22 }
  0xe3   : > { %v2723_v53 = vunpack.i.l.bf16 %v2722_v27  ;;  %2901 = vrot.lane.b32.xlu1 %v3144_v10, %s3047_s13  ;;  %v2724_v7 = vunpack.i.h.bf16 %v2722_v27 }
  0xe4   : > { %v3560_v40 = vsel %vm3997_vm14, %v2728_v48, %v3988_v38  ;;  %2896 = vrot.lane.b32.xlu0 %v3144_v10, %s3046_s12  ;;  %2275 = vmatprep.subr.bf16.mxu0 %v2274_v35  ;;  %v916_v27 = vsel %vm3997_vm14, %v2719_v13, %v2728_v48 }
  0xe5   : > { %v3564_v55 = vpop.permute.xlu1 %2736  ;;  %v956_v34 = vsel %vm3998_vm15, %v2723_v53, %v2713_v46  ;;  %v958_v2 = vsel %vm3998_vm15, %v2714_v29, %v2724_v7  ;;  %v915_v29 = vsel %vm3997_vm14, %v2709_v49, %v2719_v13  ;;  %vm4007_vm14 = vcmask 457728  }
  0xe6   : > { %v3568_v62 = vpop.permute.xlu0 %2731  ;;  %v2276_v25 = vpack.c.bf16 %v956_v34, %v913_v52  ;;  %v2739_v46 = vunpack.i.h.bf16 %v3564_v55  ;;  %v2738_v58 = vunpack.i.l.bf16 %v3564_v55  ;;  %v2328_v55 = vpack.c.bf16 %v958_v2, %v915_v29  ;;  %v3600_v29 = vld [vmem:[%s3115_s25 + $0x40] sm:$0xff] }
  0xe7   : > { %v3991_v43 = vunpack.i.h.bf16 %v3568_v62  ;;  %v2733_v38 = vunpack.i.l.bf16 %v3568_v62  ;;  %867 = vrot.lane.b32.xlu1 %v3153_v12, %s3047_s13  ;;  %s2245_s13 = sshll.u32 %s4092_s18, 6 }
  0xe8   : > { %824 = vrot.lane.b32.xlu0 %v3153_v12, %s3046_s12  ;;  %2277 = vmatpush1.bf16.msra.mxu0 %v2276_v25  ;;  %v1000_v49 = vsel %vm4002_vm12, %v2738_v58, %v2739_v46 }
  0xe9   : > { %v3583_v22 = vsel %vm3998_vm15, %v2733_v38, %v3991_v43  ;;  %v2747_v53 = vpop.permute.xlu1 %2746  ;;  %v959_v35 = vsel %vm3998_vm15, %v2724_v7, %v2733_v38  ;;  %vm4008_vm15 = vcmask 449536  }
  0xea   : > { %v2742_v25 = vpop.permute.xlu0 %2741  ;;  %v2326_v48 = vpack.c.bf16 %v959_v35, %v916_v27  ;;  %v2748_v38 = vunpack.i.l.bf16 %v2747_v53  ;;  %v2749_v47 = vunpack.i.h.bf16 %v2747_v53 }
  0xeb   : > { %v2744_v52 = vunpack.i.h.bf16 %v2742_v25  ;;  %v2743_v34 = vunpack.i.l.bf16 %v2742_v25  ;;  %2911 = vrot.lane.b32.xlu1 %v3144_v10, %s3049_s15 }
  0xec   : > { %2906 = vrot.lane.b32.xlu0 %v3144_v10, %s3048_s14  ;;  %2327 = vmatprep.subr.bf16.mxu1 %v2326_v48  ;;  %v3605_v10 = vld [vmem:[%s3115_s25 + $0x30] sm:$0xff]  ;;  %v3608_v48 = vld [vmem:[%s3115_s25 + $0x38] sm:$0xff]  ;;  %v999_v1 = vsel %vm4002_vm12, %v2748_v38, %v2738_v58 }
  0xed   : > { %2329 = vmatpush1.bf16.msra.mxu1 %v2328_v55  ;;  %v3593_v7 = vpop.permute.xlu1 %2756  ;;  %v1043_v13 = vsel %vm4003_vm13, %v2743_v34, %v2744_v52  ;;  %v3612_v55 = vpack.i.bf16 %v3608_v48, %v3605_v10 }
  0xee   : > { %v3999_v27 = vunpack.i.h.bf16 %v3593_v7  ;;  %v2758_v35 = vunpack.i.l.bf16 %v3593_v7  ;;  %v2752_v25 = vpop.permute.xlu0 %2751  ;;  %v2278_v12 = vpack.c.bf16 %v1043_v13, %v1000_v49 }
  0xef   : > { %v2753_v2 = vunpack.i.l.bf16 %v2752_v25  ;;  %953 = vrot.lane.b32.xlu1 %v3600_v29, %s3049_s15  ;;  %v2754_v49 = vunpack.i.h.bf16 %v2752_v25 }
  0xf0   : > { %v3617_v43 = vsel %vm4002_vm12, %v2758_v35, %v3999_v27  ;;  %910 = vrot.lane.b32.xlu0 %v3600_v29, %s3048_s14  ;;  %2279 = vmatprep.subr.bf16.mxu0 %v2278_v12  ;;  %v1002_v12 = vsel %vm4002_vm12, %v2749_v47, %v2758_v35  ;;  %v1001_v35 = vsel %vm4002_vm12, %v2739_v46, %v2749_v47  ;;  %vm4011_vm12 = vcmask 441344  }
  0xf1   : > { %v2767_v13 = vpop.permute.xlu1 %2766  ;;  %v1042_v21 = vsel %vm4003_vm13, %v2753_v2, %v2743_v34  ;;  %v1044_v58 = vsel %vm4003_vm13, %v2744_v52, %v2754_v49 }
  0xf2   : > { %v3623_v8 = vpop.permute.xlu0 %2761  ;;  %v2280_v4 = vpack.c.bf16 %v1042_v21, %v999_v1  ;;  %v2769_v53 = vunpack.i.h.bf16 %v2767_v13  ;;  %v2768_v34 = vunpack.i.l.bf16 %v2767_v13  ;;  %v2332_v13 = vpack.c.bf16 %v1044_v58, %v1001_v35 }
  0xf3   : > { %v4000_v56 = vunpack.i.h.bf16 %v3623_v8  ;;  %v2763_v33 = vunpack.i.l.bf16 %v3623_v8  ;;  %2921 = vrot.lane.b32.xlu1 %v3612_v55, %s3051_s17 }
  0xf4   : > { %2916 = vrot.lane.b32.xlu0 %v3612_v55, %s3050_s16  ;;  %2281 = vmatpush1.bf16.msra.mxu0 %v2280_v4 }
  0xf5   : > { %v3636_v1 = vsel %vm4003_vm13, %v2763_v33, %v4000_v56  ;;  %v2777_v21 = vpop.permute.xlu1 %2776  ;;  %v1045_v38 = vsel %vm4003_vm13, %v2754_v49, %v2763_v33  ;;  %v3647_v56 = vld [vmem:[%s3115_s25 + $0x48] sm:$0xff]  ;;  %vm4012_vm13 = vcmask 375808  }
  0xf6   : > { %v2772_v4 = vpop.permute.xlu0 %2771  ;;  %v2330_v2 = vpack.c.bf16 %v1045_v38, %v1002_v12  ;;  %v2778_v33 = vunpack.i.l.bf16 %v2777_v21  ;;  %v1087_v12 = vsel %vm4007_vm14, %v2768_v34, %v2769_v53  ;;  %v3657_v58 = vpack.i.bf16 %v3647_v56, %v3600_v29 }
  0xf7   : > { %v2774_v52 = vunpack.i.h.bf16 %v2772_v4  ;;  %v2773_v27 = vunpack.i.l.bf16 %v2772_v4  ;;  %1039 = vrot.lane.b32.xlu1 %v3600_v29, %s3051_s17  ;;  %s2237_s17 = sshll.u32 %s4092_s18, 3 }
  0xf8   : > { %996 = vrot.lane.b32.xlu0 %v3600_v29, %s3050_s16  ;;  %2331 = vmatprep.subr.bf16.mxu1 %v2330_v2  ;;  %v2779_v2 = vunpack.i.h.bf16 %v2777_v21  ;;  %s3940_s16 = scalar_lea.vmem %s3969_s3, %s2245_s13  ;;  %s296_s26 = scalar_lea.vmem %s3970_s4, %s2237_s17 }
  0xf9   : > { %2333 = vmatpush1.bf16.msra.mxu1 %v2332_v13  ;;  %v3649_v49 = vpop.permute.xlu1 %1075  ;;  %v1130_v47 = vsel %vm4008_vm15, %v2773_v27, %v2774_v52  ;;  %v1086_v13 = vsel %vm4007_vm14, %v2778_v33, %v2768_v34 }
  0xfa   : > { %v2782_v46 = vpop.permute.xlu0 %2781  ;;  %v2282_v38 = vpack.c.bf16 %v1130_v47, %v1087_v12  ;;  %v1089_v19 = vsel %vm4007_vm14, %v2779_v2, %v3649_v49 }
  0xfb   : > { %v2784_v4 = vunpack.i.h.bf16 %v2782_v46  ;;  %v2783_v25 = vunpack.i.l.bf16 %v2782_v46  ;;  %2931 = vrot.lane.b32.xlu1 %v3612_v55, %s4014_s27 }
  0xfc   : > { %2926 = vrot.lane.b32.xlu0 %v3612_v55, %s4015_s28  ;;  %2283 = vmatprep.subr.bf16.mxu0 %v2282_v38 }
  0xfd   : > { %v2787_v35 = vpop.permute.xlu1 %2786  ;;  %v1129_v11 = vsel %vm4008_vm15, %v2783_v25, %v2773_v27  ;;  %v1131_v46 = vsel %vm4008_vm15, %v2774_v52, %v2784_v4  ;;  %v1088_v27 = vsel %vm4007_vm14, %v2769_v53, %v2779_v2  ;;  %vm4013_vm14 = vcmask 367616  }
  0xfe   : > { %v3663_v12 = vpop.permute.xlu0 %1118  ;;  %v2284_v47 = vpack.c.bf16 %v1129_v11, %v1086_v13  ;;  %v2789_v34 = vunpack.i.h.bf16 %v2787_v35  ;;  %v2788_v11 = vunpack.i.l.bf16 %v2787_v35  ;;  %v2336_v52 = vpack.c.bf16 %v1131_v46, %v1088_v27 }
  0xff   : > { %v1132_v21 = vsel %vm4008_vm15, %v2784_v4, %v3663_v12  ;;  %2941 = vrot.lane.b32.xlu1 %v3657_v58, %s4014_s27  ;;  %vm1300_vm15 = vcmask 359424  }
 0x100   : > { %v2334_v38 = vpack.c.bf16 %v1132_v21, %v1089_v19  ;;  %2936 = vrot.lane.b32.xlu0 %v3657_v58, %s4015_s28  ;;  %2285 = vmatpush1.bf16.msra.mxu0 %v2284_v47  ;;  %v1173_v53 = vsel %vm4011_vm12, %v2788_v11, %v2789_v34  ;;  %s303_s28 = scalar_lea.vmem %s3971_s5, %s2237_s17 }
 0x101   : > { %v2797_v25 = vpop.permute.xlu1 %2796 }
 0x102   : > { %v2792_v33 = vpop.permute.xlu0 %2791  ;;  %2335 = vmatprep.subr.bf16.mxu1 %v2334_v38  ;;  %v2798_v19 = vunpack.i.l.bf16 %v2797_v25  ;;  %v2799_v27 = vunpack.i.h.bf16 %v2797_v25 }
 0x103   : > { %v2794_v13 = vunpack.i.h.bf16 %v2792_v33  ;;  %v2793_v4 = vunpack.i.l.bf16 %v2792_v33  ;;  %2337 = vmatpush1.bf16.msra.mxu1 %v2336_v52  ;;  %2951 = vrot.lane.b32.xlu1 %v3612_v55, %s4016_s29 }
 0x104   : > { %2946 = vrot.lane.b32.xlu0 %v3612_v55, %s4017_s30  ;;  %v1172_v33 = vsel %vm4011_vm12, %v2798_v19, %v2788_v11  ;;  %v1174_v11 = vsel %vm4011_vm12, %v2789_v34, %v2799_v27 }
 0x105   : > { %v3679_v47 = vpop.permute.xlu1 %1161  ;;  %v1216_v2 = vsel %vm4012_vm13, %v2793_v4, %v2794_v13 }
 0x106   : > { %4018 = vst [vmem:[#allocation3_spill] sm:$0xff] %v3679_v47  ;;  %v2802_v35 = vpop.permute.xlu0 %2801  ;;  %v2286_v46 = vpack.c.bf16 %v1216_v2, %v1173_v53  ;;  %v1175_v2 = vsel %vm4011_vm12, %v2799_v27, %v3679_v47  ;;  %vm1343_vm12 = vcmask 293888  }
 0x107   : > { %v2804_v21 = vunpack.i.h.bf16 %v2802_v35  ;;  %v2803_v38 = vunpack.i.l.bf16 %v2802_v35  ;;  %2961 = vrot.lane.b32.xlu1 %v3657_v58, %s4016_s29 }
 0x108   : > { %2956 = vrot.lane.b32.xlu0 %v3657_v58, %s4017_s30  ;;  %2287 = vmatprep.subr.bf16.mxu0 %v2286_v46 }
 0x109   : > { %v2807_v52 = vpop.permute.xlu1 %2806  ;;  %v1215_v50 = vsel %vm4012_vm13, %v2803_v38, %v2793_v4  ;;  %v1217_v53 = vsel %vm4012_vm13, %v2794_v13, %v2804_v21 }
 0x10a   : > { %v3689_v59 = vpop.permute.xlu0 %1204  ;;  %v2288_v17 = vpack.c.bf16 %v1215_v50, %v1172_v33  ;;  %v2809_v4 = vunpack.i.h.bf16 %v2807_v52  ;;  %v2808_v50 = vunpack.i.l.bf16 %v2807_v52  ;;  %v2340_v13 = vpack.c.bf16 %v1217_v53, %v1174_v11 }
 0x10b   : > { %4019 = vst [vmem:[#allocation4_spill] sm:$0xff] %v3689_v59  ;;  %v1218_v25 = vsel %vm4012_vm13, %v2804_v21, %v3689_v59  ;;  %2971 = vrot.lane.b32.xlu1 %v3612_v55, %s4020_s6  ;;  %vm1386_vm13 = vcmask 285696  }
 0x10c   : > { %v2338_v35 = vpack.c.bf16 %v1218_v25, %v1175_v2  ;;  %2966 = vrot.lane.b32.xlu0 %v3612_v55, %s4021_s7  ;;  %2289 = vmatpush1.bf16.msra.mxu0 %v2288_v17  ;;  %v1259_v34 = vsel %vm4013_vm14, %v2808_v50, %v2809_v4 }
 0x10d   : > { %v2817_v19 = vpop.permute.xlu1 %2816 }
 0x10e   : > { %v2812_v46 = vpop.permute.xlu0 %2811  ;;  %2339 = vmatprep.subr.bf16.mxu1 %v2338_v35  ;;  %v2818_v17 = vunpack.i.l.bf16 %v2817_v19  ;;  %v2819_v35 = vunpack.i.h.bf16 %v2817_v19 }
 0x10f   : > { %v2814_v38 = vunpack.i.h.bf16 %v2812_v46  ;;  %v2813_v21 = vunpack.i.l.bf16 %v2812_v46  ;;  %2341 = vmatpush1.bf16.msra.mxu1 %v2340_v13  ;;  %2981 = vrot.lane.b32.xlu1 %v3657_v58, %s4020_s6 }
 0x110   : > { %2976 = vrot.lane.b32.xlu0 %v3657_v58, %s4021_s7  ;;  %v1258_v13 = vsel %vm4013_vm14, %v2818_v17, %v2808_v50  ;;  %v1260_v50 = vsel %vm4013_vm14, %v2809_v4, %v2819_v35 }
 0x111   : > { %v3705_v33 = vpop.permute.xlu1 %1247  ;;  %v1302_v27 = vsel %vm1300_vm15, %v2813_v21, %v2814_v38 }
 0x112   : > { %v2822_v52 = vpop.permute.xlu0 %2821  ;;  %v2290_v53 = vpack.c.bf16 %v1302_v27, %v1259_v34  ;;  %v1261_v27 = vsel %vm4013_vm14, %v2819_v35, %v3705_v33  ;;  %vm1429_vm14 = vcmask 277504  }
 0x113   : > { %v2824_v2 = vunpack.i.h.bf16 %v2822_v52  ;;  %v2823_v25 = vunpack.i.l.bf16 %v2822_v52  ;;  %2991 = vrot.lane.b32.xlu1 %v3612_v55, %s3059_s24 }
 0x114   : > { %2986 = vrot.lane.b32.xlu0 %v3612_v55, %s3058_s22  ;;  %2291 = vmatprep.subr.bf16.mxu0 %v2290_v53 }
 0x115   : > { %v2827_v11 = vpop.permute.xlu1 %2826  ;;  %v1301_v46 = vsel %vm1300_vm15, %v2823_v25, %v2813_v21  ;;  %v1303_v34 = vsel %vm1300_vm15, %v2814_v38, %v2824_v2 }
 0x116   : > { %v3715_v47 = vpop.permute.xlu0 %1290  ;;  %v2292_v59 = vpack.c.bf16 %v1301_v46, %v1258_v13  ;;  %v2829_v21 = vunpack.i.h.bf16 %v2827_v11  ;;  %v2828_v17 = vunpack.i.l.bf16 %v2827_v11  ;;  %v2344_v38 = vpack.c.bf16 %v1303_v34, %v1260_v50 }
 0x117   : > { %v1304_v19 = vsel %vm1300_vm15, %v2824_v2, %v3715_v47  ;;  %3001 = vrot.lane.b32.xlu1 %v3657_v58, %s3059_s24 }
 0x118   : > { %v2342_v55 = vpack.c.bf16 %v1304_v19, %v1261_v27  ;;  %2996 = vrot.lane.b32.xlu0 %v3657_v58, %s3058_s22  ;;  %2293 = vmatpush1.bf16.msra.mxu0 %v2292_v59  ;;  %v1345_v4 = vsel %vm1343_vm12, %v2828_v17, %v2829_v21  ;;  %v2523_v19 = vunpack.i.l.bf16 %v3252_v23 }
 0x119   : > { %v2837_v52 = vpop.permute.xlu1 %2836 }
 0x11a   : > { %v2832_v53 = vpop.permute.xlu0 %2831  ;;  %2343 = vmatprep.subr.bf16.mxu1 %v2342_v55  ;;  %v2838_v59 = vunpack.i.l.bf16 %v2837_v52  ;;  %v2839_v27 = vunpack.i.h.bf16 %v2837_v52 }
 0x11b   : > { %v2834_v25 = vunpack.i.h.bf16 %v2832_v53  ;;  %v2833_v2 = vunpack.i.l.bf16 %v2832_v53  ;;  %2345 = vmatpush1.bf16.msra.mxu1 %v2344_v38  ;;  %1423 = vrot.lane.b32.xlu1 %v3608_v48, %s3060_s23 }
 0x11c   : > { %1421 = vrot.lane.b32.xlu0 %v3605_v10, %s3060_s23  ;;  %v1344_v50 = vsel %vm1343_vm12, %v2838_v59, %v2828_v17  ;;  %v1346_v17 = vsel %vm1343_vm12, %v2829_v21, %v2839_v27  ;;  %v3008_v21 = vld [vmem:[%s3115_s25 + $0x28] sm:$0xff] }
 0x11d   : > { %v3731_v58 = vpop.permute.xlu1 %1333  ;;  %v1388_v35 = vsel %vm1386_vm13, %v2833_v2, %v2834_v25 }
 0x11e   : > { %v2842_v11 = vpop.permute.xlu0 %2841  ;;  %v2294_v13 = vpack.c.bf16 %v1388_v35, %v1345_v4 }
 0x11f   : > { %v2844_v46 = vunpack.i.h.bf16 %v2842_v11  ;;  %v2843_v34 = vunpack.i.l.bf16 %v2842_v11  ;;  %1427 = vrot.lane.b32.xlu1 %v3647_v56, %s3060_s23  ;;  %v1347_v56 = vsel %vm1343_vm12, %v2839_v27, %v3731_v58  ;;  %v4022_v11 = vunpack.i.h.bf16 %v3239_v16  ;;  %v3009_v16 = vld [vmem:[%s3115_s25 + $0x20] sm:$0xff] }
 0x120   : > { %1425 = vrot.lane.b32.xlu0 %v3600_v29, %s3060_s23  ;;  %2295 = vmatprep.subr.bf16.mxu0 %v2294_v13 }
 0x121   : > { %v1414_v55 = vpop.permute.xlu1 %1413  ;;  %v1387_v38 = vsel %vm1386_vm13, %v2843_v34, %v2833_v2  ;;  %v1389_v35 = vsel %vm1386_vm13, %v2834_v25, %v2844_v46  ;;  %v359_v13 = vsel %vm353_vm0, %v4022_v11, %v2523_v19 }
 0x122   : > { %v3742_v53 = vpop.permute.xlu0 %1376  ;;  %v2296_v4 = vpack.c.bf16 %v1387_v38, %v1344_v50  ;;  %v2348_v2 = vpack.c.bf16 %v1389_v35, %v1346_v17  ;;  %v2350_v27 = vpack.c.bf16 %v359_v13, %v3008_v21  ;;  %v2524_v35 = vunpack.i.h.bf16 %v3252_v23 }
 0x123   : > { %v1390_v29 = vsel %vm1386_vm13, %v2844_v46, %v3742_v53  ;;  %v3758_v46 = vld [vmem:[%s3967_s1] sm:$0xff]  ;;  %v4024_v23 = vunpack.i.h.bf16 %v3277_v45 }
 0x124   : > { %v2346_v52 = vpack.c.bf16 %v1390_v29, %v1347_v56  ;;  %2297 = vmatpush1.bf16.msra.mxu0 %v2296_v4  ;;  %v2352_v4 = vpack.c.bf16 %v3248_v20, %v3009_v16  ;;  %v360_v11 = vsel %vm353_vm0, %v2523_v19, %v2524_v35 }
 0x125   : > { %v1412_v59 = vpop.permute.xlu1 %1411  ;;  %v2404_v19 = vpack.c.bf16 %v360_v11, %v3605_v10  ;;  %v4027_v11 = vunpack.i.h.bf16 %v3320_v26 }
 0x126   : > { %v1416_v25 = vpop.permute.xlu0 %1415  ;;  %2347 = vmatprep.subr.bf16.mxu1 %v2346_v52  ;;  %v1430_v34 = vsel %vm1429_vm14, %v1412_v59, %v1414_v55  ;;  %v4023_v52 = vunpack.i.h.bf16 %v3290_v57  ;;  %v361_v59 = vsel %vm353_vm0, %v2524_v35, %v3262_v32  ;;  %v4025_v32 = vpack.c.bf16 %v3310_v5, %v3299_v61  ;;  %v3010_v61 = vld [vmem:[%s3967_s1 + $0x8] sm:$0xff] }
 0x127   : > { %2349 = vmatpush1.bf16.msra.mxu1 %v2348_v2  ;;  %v1431_v50 = vsel %vm1429_vm14, %v1414_v55, %v1416_v25  ;;  %vm4039_vm0 = vcmask 138240  }
 0x128   : > { %1728 = vmatprep.subr.mxu0 %v1431_v50 }
 0x129   : > { %1729 = vmatpush1.msra.mxu0 %v1430_v34  ;;  %v2852_v38 = vpop.permute.xlu1 %2851 }
 0x12a   : > { %v2853_v56 = vunpack.i.l.bf16 %v2852_v38  ;;  %v2847_v29 = vpop.permute.xlu0 %2846  ;;  %2351 = vmatprep.subr.bf16.mxu0 %v2350_v27  ;;  %1741 = vmatmul.mubr.f32.vlgmr.msra.gmra.mrb[0].mxu0 %v3758_v46  ;;  %v2854_v13 = vunpack.i.h.bf16 %v2852_v38  ;;  %v2402_v27 = vpack.c.bf16 %v361_v59, %v3608_v48  ;;  %v4026_v59 = vunpack.i.h.bf16 %v3339_v41 }
 0x12b   : > { %v2848_v55 = vunpack.i.l.bf16 %v2847_v29  ;;  %2353 = vmatpush1.bf16.msra.mxu0 %v2352_v4  ;;  %2241 = vmatprep.mubr.msk.f32.mxu0 %vm1672_vm5, %v3337_v39  ;;  %v2849_v34 = vunpack.i.h.bf16 %v2847_v29 }
 0x12c   : > { %v445_v17 = vsel %vm439_vm1, %v4023_v52, %v2853_v56  ;;  %v446_v38 = vsel %vm439_vm1, %v2853_v56, %v2854_v13 }
 0x12d   : > { %v3772_v20 = vpop.permute.xlu1 %1419  ;;  %v402_v2 = vsel %vm396_vm2, %v4024_v23, %v2848_v55  ;;  %v403_v16 = vsel %vm396_vm2, %v2848_v55, %v2849_v34 }
 0x12e   : > { %v1418_v50 = vpop.permute.xlu0 %1417  ;;  %v2354_v21 = vpack.c.bf16 %v445_v17, %v402_v2  ;;  %v2408_v10 = vpack.c.bf16 %v446_v38, %v403_v16 }
 0x12f   : > { %v1433_v57 = vsel %vm1429_vm14, %v1418_v50, %v3772_v20  ;;  %v1432_v39 = vsel %vm1429_vm14, %v1416_v25, %v1418_v50 }
 0x130   : > { %1799 = vmatprep.subr.mxu1 %v1433_v57  ;;  %2355 = vmatprep.subr.bf16.mxu0 %v2354_v21 }
 0x131   : > { %1800 = vmatpush1.msra.mxu1 %v1432_v39  ;;  %2357 = vmatpush1.bf16.msra.mxu0 %v4025_v32  ;;  %v438_v45 = vpop.permute.xlu1 %437 }
 0x132   : > { %v447_v4 = vsel %vm439_vm1, %v2854_v13, %v438_v45  ;;  %v395_v35 = vpop.permute.xlu0 %394  ;;  %2403 = vmatprep.subr.bf16.mxu1 %v2402_v27  ;;  %1812 = vmatmul.mubr.f32.vlgmr.msra.gmra.mrb[0].mxu1 %v3758_v46  ;;  %v4028_v45 = vpack.c.bf16 %v3363_v51, %v3352_v44  ;;  %vm4041_vm1 = vcmask 146432  }
 0x133   : > { %v404_v48 = vsel %vm396_vm2, %v2849_v34, %v395_v35  ;;  %2405 = vmatpush1.bf16.msra.mxu1 %v2404_v19  ;;  %2242 = vmatprep.mubr.msk.f32.mxu1 %vm1672_vm5, %v3010_v61  ;;  %vm4042_vm2 = vmmov %vm4039_vm0 }
 0x134   : > { %v2406_v5 = vpack.c.bf16 %v447_v4, %v404_v48  ;;  %v4029_v48 = vunpack.i.h.bf16 %v3387_v28  ;;  %vm4045_vm5 = vmmov %vm4041_vm1 }
 0x135   : > { %v2862_v25 = vpop.permute.xlu1 %2861 }
 0x136   : > { %v2864_v56 = vunpack.i.h.bf16 %v2862_v25  ;;  %v2863_v29 = vunpack.i.l.bf16 %v2862_v25  ;;  %v2857_v55 = vpop.permute.xlu0 %2856  ;;  %2407 = vmatprep.subr.bf16.mxu1 %v2406_v5 }
 0x137   : > { %v2859_v52 = vunpack.i.h.bf16 %v2857_v55  ;;  %v2858_v17 = vunpack.i.l.bf16 %v2857_v55  ;;  %2409 = vmatpush1.bf16.msra.mxu1 %v2408_v10  ;;  %v4030_v10 = vunpack.i.h.bf16 %v3373_v3 }
 0x138   : > { %v531_v23 = vsel %vm525_vm4, %v4026_v59, %v2863_v29  ;;  %v532_v34 = vsel %vm525_vm4, %v2863_v29, %v2864_v56  ;;  %v4031_v59 = vpack.c.bf16 %v3407_v37, %v3396_v9 }
 0x139   : > { %v524_v2 = vpop.permute.xlu1 %523  ;;  %v488_v13 = vsel %vm482_vm3, %v4027_v11, %v2858_v17  ;;  %v489_v50 = vsel %vm482_vm3, %v2858_v17, %v2859_v52 }
 0x13a   : > { %v533_v21 = vsel %vm525_vm4, %v2864_v56, %v524_v2  ;;  %v481_v57 = vpop.permute.xlu0 %480  ;;  %v2358_v39 = vpack.c.bf16 %v531_v23, %v488_v13  ;;  %v2412_v41 = vpack.c.bf16 %v532_v34, %v489_v50  ;;  %v4032_v50 = vunpack.i.h.bf16 %v3431_v14  ;;  %vm4044_vm4 = vmmov %vm4039_vm0 }
 0x13b   : > { %v490_v27 = vsel %vm482_vm3, %v2859_v52, %v481_v57  ;;  %vm4043_vm3 = vmmov %vm4041_vm1 }
 0x13c   : > { %v2410_v32 = vpack.c.bf16 %v533_v21, %v490_v27  ;;  %2359 = vmatprep.subr.bf16.mxu0 %v2358_v39  ;;  %v4033_v39 = vunpack.i.h.bf16 %v3417_v15 }
 0x13d   : > { %2361 = vmatpush1.bf16.msra.mxu0 %v4028_v45  ;;  %v2872_v26 = vpop.permute.xlu1 %2871 }
 0x13e   : > { %v2874_v19 = vunpack.i.h.bf16 %v2872_v26  ;;  %v2873_v38 = vunpack.i.l.bf16 %v2872_v26  ;;  %v2867_v16 = vpop.permute.xlu0 %2866  ;;  %2411 = vmatprep.subr.bf16.mxu1 %v2410_v32 }
 0x13f   : > { %v2869_v4 = vunpack.i.h.bf16 %v2867_v16  ;;  %v2868_v35 = vunpack.i.l.bf16 %v2867_v16  ;;  %2413 = vmatpush1.bf16.msra.mxu1 %v2412_v41 }
 0x140   : > { %v617_v61 = vsel %vm611_vm7, %v4029_v48, %v2873_v38  ;;  %v618_v44 = vsel %vm611_vm7, %v2873_v38, %v2874_v19  ;;  %v4034_v38 = vpack.c.bf16 %v3451_v31, %v3440_v24 }
 0x141   : > { %v610_v5 = vpop.permute.xlu1 %609  ;;  %v574_v25 = vsel %vm568_vm6, %v4030_v10, %v2868_v35  ;;  %v575_v51 = vsel %vm568_vm6, %v2868_v35, %v2869_v4 }
 0x142   : > { %v619_v56 = vsel %vm611_vm7, %v2874_v19, %v610_v5  ;;  %v567_v29 = vpop.permute.xlu0 %566  ;;  %v2362_v55 = vpack.c.bf16 %v617_v61, %v574_v25  ;;  %v2416_v28 = vpack.c.bf16 %v618_v44, %v575_v51  ;;  %v4035_v5 = vunpack.i.h.bf16 %v3475_v18 }
 0x143   : > { %v576_v52 = vsel %vm568_vm6, %v2869_v4, %v567_v29  ;;  %v4036_v44 = vunpack.i.h.bf16 %v3461_v54  ;;  %vm4048_vm6 = vcmask 64512   ;;  %vm4050_vm7 = vcmask 130048  }
 0x144   : > { %v2414_v17 = vpack.c.bf16 %v619_v56, %v576_v52  ;;  %2363 = vmatprep.subr.bf16.mxu0 %v2362_v55 }
 0x145   : > { %2365 = vmatpush1.bf16.msra.mxu0 %v4031_v59  ;;  %v2882_v3 = vpop.permute.xlu1 %2881 }
 0x146   : > { %v2884_v23 = vunpack.i.h.bf16 %v2882_v3  ;;  %v2883_v2 = vunpack.i.l.bf16 %v2882_v3  ;;  %v2877_v11 = vpop.permute.xlu0 %2876  ;;  %2415 = vmatprep.subr.bf16.mxu1 %v2414_v17 }
 0x147   : > { %v2879_v13 = vunpack.i.h.bf16 %v2877_v11  ;;  %v2878_v34 = vunpack.i.l.bf16 %v2877_v11  ;;  %2417 = vmatpush1.bf16.msra.mxu1 %v2416_v28  ;;  %v4037_v28 = vpack.c.bf16 %v3495_v42, %v3484_v36 }
 0x148   : > { %v703_v21 = vsel %vm697_vm9, %v4032_v50, %v2883_v2  ;;  %v704_v9 = vsel %vm697_vm9, %v2883_v2, %v2884_v23 }
 0x149   : > { %v696_v57 = vpop.permute.xlu1 %695  ;;  %v660_v27 = vsel %vm654_vm8, %v4033_v39, %v2878_v34  ;;  %v661_v37 = vsel %vm654_vm8, %v2878_v34, %v2879_v13 }
 0x14a   : > { %v705_v32 = vsel %vm697_vm9, %v2884_v23, %v696_v57  ;;  %v653_v41 = vpop.permute.xlu0 %652  ;;  %v2366_v45 = vpack.c.bf16 %v703_v21, %v660_v27  ;;  %v2420_v14 = vpack.c.bf16 %v704_v9, %v661_v37  ;;  %v4040_v21 = vunpack.i.h.bf16 %v3505_v0  ;;  %vm4052_vm9 = vmmov %vm4050_vm7 }
 0x14b   : > { %v662_v26 = vsel %vm654_vm8, %v2879_v13, %v653_v41  ;;  %v4038_v13 = vunpack.i.h.bf16 %v3524_v60  ;;  %v4046_v41 = vpack.c.bf16 %v3539_v63, %v3516_v30  ;;  %vm4051_vm8 = vmmov %vm4048_vm6 }
 0x14c   : > { %v2418_v19 = vpack.c.bf16 %v705_v32, %v662_v26  ;;  %2367 = vmatprep.subr.bf16.mxu0 %v2366_v45 }
 0x14d   : > { %2369 = vmatpush1.bf16.msra.mxu0 %v4034_v38  ;;  %v2892_v15 = vpop.permute.xlu1 %2891 }
 0x14e   : > { %v2894_v16 = vunpack.i.h.bf16 %v2892_v15  ;;  %v2893_v4 = vunpack.i.l.bf16 %v2892_v15  ;;  %v2887_v35 = vpop.permute.xlu0 %2886  ;;  %2419 = vmatprep.subr.bf16.mxu1 %v2418_v19  ;;  %v4047_v15 = vunpack.i.h.bf16 %v3568_v62 }
 0x14f   : > { %v2889_v48 = vunpack.i.h.bf16 %v2887_v35  ;;  %v2888_v61 = vunpack.i.l.bf16 %v2887_v35  ;;  %2421 = vmatpush1.bf16.msra.mxu1 %v2420_v14  ;;  %v4049_v35 = vunpack.i.h.bf16 %v3549_v6 }
 0x150   : > { %v789_v10 = vsel %vm783_vm11, %v4035_v5, %v2893_v4  ;;  %v790_v24 = vsel %vm783_vm11, %v2893_v4, %v2894_v16 }
 0x151   : > { %v782_v25 = vpop.permute.xlu1 %781  ;;  %v746_v51 = vsel %vm740_vm10, %v4036_v44, %v2888_v61  ;;  %v747_v31 = vsel %vm740_vm10, %v2888_v61, %v2889_v48 }
 0x152   : > { %v791_v56 = vsel %vm783_vm11, %v2894_v16, %v782_v25  ;;  %v739_v29 = vpop.permute.xlu0 %738  ;;  %v2370_v55 = vpack.c.bf16 %v789_v10, %v746_v51  ;;  %v2424_v18 = vpack.c.bf16 %v790_v24, %v747_v31  ;;  %vm4054_vm11 = vmmov %vm4050_vm7  ;;  %v4055_v51 = vpack.c.bf16 %v3583_v22, %v3560_v40 }
 0x153   : > { %v748_v52 = vsel %vm740_vm10, %v2889_v48, %v739_v29  ;;  %vm4053_vm10 = vmmov %vm4048_vm6 }
 0x154   : > { %v2422_v17 = vpack.c.bf16 %v791_v56, %v748_v52  ;;  %2371 = vmatprep.subr.bf16.mxu0 %v2370_v55  ;;  %v4056_v52 = vunpack.i.h.bf16 %v3623_v8 }
 0x155   : > { %2373 = vmatpush1.bf16.msra.mxu0 %v4037_v28  ;;  %v2902_v54 = vpop.permute.xlu1 %2901  ;;  %v4058_v28 = vunpack.i.h.bf16 %v3593_v7 }
 0x156   : > { %v2904_v59 = vunpack.i.h.bf16 %v2902_v54  ;;  %v2903_v3 = vunpack.i.l.bf16 %v2902_v54  ;;  %v2897_v23 = vpop.permute.xlu0 %2896  ;;  %2423 = vmatprep.subr.bf16.mxu1 %v2422_v17 }
 0x157   : > { %v2899_v2 = vunpack.i.h.bf16 %v2897_v23  ;;  %v2898_v11 = vunpack.i.l.bf16 %v2897_v23  ;;  %2425 = vmatpush1.bf16.msra.mxu1 %v2424_v18 }
 0x158   : > { %v875_v34 = vsel %vm4039_vm0, %v4038_v13, %v2903_v3  ;;  %v876_v36 = vsel %vm4042_vm2, %v2903_v3, %v2904_v59  ;;  %vm4057_vm0 = vcmask 48128   ;;  %v4064_v13 = vpack.c.bf16 %v3636_v1, %v3617_v43 }
 0x159   : > { %v868_v50 = vpop.permute.xlu1 %867  ;;  %v832_v57 = vsel %vm4041_vm1, %v4040_v21, %v2898_v11  ;;  %v833_v42 = vsel %vm4043_vm3, %v2898_v11, %v2899_v2  ;;  %vm4059_vm1 = vcmask 56320   ;;  %vm4060_vm2 = vmmov %vm4057_vm0 }
 0x15a   : > { %v877_v39 = vsel %vm4044_vm4, %v2904_v59, %v868_v50  ;;  %v825_v27 = vpop.permute.xlu0 %824  ;;  %v2374_v9 = vpack.c.bf16 %v875_v34, %v832_v57  ;;  %v2428_v60 = vpack.c.bf16 %v876_v36, %v833_v42  ;;  %vm4061_vm3 = vmmov %vm4059_vm1 }
 0x15b   : > { %v834_v37 = vsel %vm4045_vm5, %v2899_v2, %v825_v27  ;;  %vm4062_vm4 = vmmov %vm4057_vm0 }
 0x15c   : > { %v2426_v32 = vpack.c.bf16 %v877_v39, %v834_v37  ;;  %2375 = vmatprep.subr.bf16.mxu0 %v2374_v9  ;;  %vm4063_vm5 = vmmov %vm4059_vm1 }
 0x15d   : > { %2377 = vmatpush1.bf16.msra.mxu0 %v4046_v41  ;;  %v2912_v0 = vpop.permute.xlu1 %2911 }
 0x15e   : > { %v2914_v45 = vunpack.i.h.bf16 %v2912_v0  ;;  %v2913_v26 = vunpack.i.l.bf16 %v2912_v0  ;;  %v2907_v19 = vpop.permute.xlu0 %2906  ;;  %2427 = vmatprep.subr.bf16.mxu1 %v2426_v32 }
 0x15f   : > { %v2909_v14 = vunpack.i.h.bf16 %v2907_v19  ;;  %v2908_v38 = vunpack.i.l.bf16 %v2907_v19  ;;  %2429 = vmatpush1.bf16.msra.mxu1 %v2428_v60 }
 0x160   : > { %v961_v16 = vsel %vm4048_vm6, %v4047_v15, %v2913_v26  ;;  %v962_v30 = vsel %vm4051_vm8, %v2913_v26, %v2914_v45  ;;  %vm4065_vm6 = vcmask 449536   ;;  %vm4067_vm8 = vcmask 457728  }
 0x161   : > { %v954_v4 = vpop.permute.xlu1 %953  ;;  %v918_v48 = vsel %vm4050_vm7, %v4049_v35, %v2908_v38  ;;  %v919_v63 = vsel %vm4052_vm9, %v2908_v38, %v2909_v14  ;;  %vm4066_vm7 = vmmov %vm4065_vm6 }
 0x162   : > { %v963_v61 = vsel %vm4053_vm10, %v2914_v45, %v954_v4  ;;  %v911_v5 = vpop.permute.xlu0 %910  ;;  %v2378_v10 = vpack.c.bf16 %v961_v16, %v918_v48  ;;  %v2432_v62 = vpack.c.bf16 %v962_v30, %v919_v63  ;;  %vm4068_vm9 = vmmov %vm4067_vm8  ;;  %v4073_v63 = vld [vmem:[#allocation4_spill] sm:$0xff] }
 0x163   : > { %v920_v25 = vsel %vm4054_vm11, %v2909_v14, %v911_v5  ;;  %vm4069_vm10 = vmmov %vm4065_vm6 }
 0x164   : > { %v2430_v44 = vpack.c.bf16 %v963_v61, %v920_v25  ;;  %2379 = vmatprep.subr.bf16.mxu0 %v2378_v10  ;;  %vm4070_vm11 = vmmov %vm4065_vm6  ;;  %v4076_v10 = vld [vmem:[#allocation3_spill] sm:$0xff] }
 0x165   : > { %2381 = vmatpush1.bf16.msra.mxu0 %v4055_v51  ;;  %v2922_v6 = vpop.permute.xlu1 %2921 }
 0x166   : > { %v2924_v24 = vunpack.i.h.bf16 %v2922_v6  ;;  %v2923_v31 = vunpack.i.l.bf16 %v2922_v6  ;;  %v2917_v56 = vpop.permute.xlu0 %2916  ;;  %2431 = vmatprep.subr.bf16.mxu1 %v2430_v44 }
 0x167   : > { %v2919_v29 = vunpack.i.h.bf16 %v2917_v56  ;;  %v2918_v55 = vunpack.i.l.bf16 %v2917_v56  ;;  %2433 = vmatpush1.bf16.msra.mxu1 %v2432_v62 }
 0x168   : > { %v1047_v17 = vsel %vm4057_vm0, %v4056_v52, %v2923_v31  ;;  %v1048_v40 = vsel %vm4060_vm2, %v2923_v31, %v2924_v24  ;;  %vm4071_vm0 = vmmov %vm4067_vm8  ;;  %vm4074_vm2 = vcmask 375808  }
 0x169   : > { %v1040_v18 = vpop.permute.xlu1 %1039  ;;  %v1004_v54 = vsel %vm4059_vm1, %v4058_v28, %v2918_v55  ;;  %v1005_v22 = vsel %vm4061_vm3, %v2918_v55, %v2919_v29  ;;  %vm4072_vm1 = vmmov %vm4071_vm0 }
 0x16a   : > { %v1049_v59 = vsel %vm4062_vm4, %v2924_v24, %v1040_v18  ;;  %v997_v3 = vpop.permute.xlu0 %996  ;;  %v2382_v23 = vpack.c.bf16 %v1047_v17, %v1004_v54  ;;  %v2436_v8 = vpack.c.bf16 %v1048_v40, %v1005_v22  ;;  %vm4075_vm3 = vmmov %vm4074_vm2  ;;  %vm4077_vm4 = vcmask 441344  }
 0x16b   : > { %v1006_v2 = vsel %vm4063_vm5, %v2919_v29, %v997_v3  ;;  %vm4078_vm5 = vmmov %vm4077_vm4 }
 0x16c   : > { %v2434_v11 = vpack.c.bf16 %v1049_v59, %v1006_v2  ;;  %2383 = vmatprep.subr.bf16.mxu0 %v2382_v23 }
 0x16d   : > { %2385 = vmatpush1.bf16.msra.mxu0 %v4064_v13  ;;  %v2932_v7 = vpop.permute.xlu1 %2931 }
 0x16e   : > { %v2934_v34 = vunpack.i.h.bf16 %v2932_v7  ;;  %v2933_v50 = vunpack.i.l.bf16 %v2932_v7  ;;  %v2927_v21 = vpop.permute.xlu0 %2926  ;;  %2435 = vmatprep.subr.bf16.mxu1 %v2434_v11 }
 0x16f   : > { %v2929_v57 = vunpack.i.h.bf16 %v2927_v21  ;;  %v2928_v36 = vunpack.i.l.bf16 %v2927_v21  ;;  %2437 = vmatpush1.bf16.msra.mxu1 %v2436_v8 }
 0x170   : > { %v1133_v42 = vsel %vm4065_vm6, %v3663_v12, %v2933_v50  ;;  %v1134_v39 = vsel %vm4066_vm7, %v2933_v50, %v2934_v34  ;;  %vm4079_vm6 = vmmov %vm4074_vm2 }
 0x171   : > { %v1090_v27 = vsel %vm4067_vm8, %v3649_v49, %v2928_v36  ;;  %v2942_v9 = vpop.permute.xlu1 %2941  ;;  %v1091_v43 = vsel %vm4068_vm9, %v2928_v36, %v2929_v57  ;;  %vm4080_vm7 = vmmov %vm4074_vm2 }
 0x172   : > { %v2388_v1 = vpack.c.bf16 %v1133_v42, %v1090_v27  ;;  %v2944_v37 = vunpack.i.h.bf16 %v2942_v9  ;;  %v2943_v32 = vunpack.i.l.bf16 %v2942_v9  ;;  %v2937_v60 = vpop.permute.xlu0 %2936  ;;  %v2386_v41 = vpack.c.bf16 %v1134_v39, %v1091_v43  ;;  %vm4081_vm8 = vmmov %vm4077_vm4 }
 0x173   : > { %v2939_v0 = vunpack.i.h.bf16 %v2937_v60  ;;  %v2938_v45 = vunpack.i.l.bf16 %v2937_v60  ;;  %vm4082_vm9 = vmmov %vm4077_vm4 }
 0x174   : > { %v1135_v26 = vsel %vm4069_vm10, %v2934_v34, %v2943_v32  ;;  %2387 = vmatprep.subr.bf16.mxu0 %v2386_v41  ;;  %v1136_v12 = vsel %vm4070_vm11, %v2943_v32, %v2944_v37  ;;  %vm4083_vm10 = vcmask 367616  }
 0x175   : > { %v1092_v19 = vsel %vm4071_vm0, %v2929_v57, %v2938_v45  ;;  %2389 = vmatpush1.bf16.msra.mxu0 %v2388_v1  ;;  %v2952_v14 = vpop.permute.xlu1 %2951  ;;  %v1093_v49 = vsel %vm4072_vm1, %v2938_v45, %v2939_v0  ;;  %vm4084_vm11 = vmmov %vm4083_vm10 }
 0x176   : > { %v2440_v38 = vpack.c.bf16 %v1135_v26, %v1092_v19  ;;  %v2954_v15 = vunpack.i.h.bf16 %v2952_v14  ;;  %v2953_v16 = vunpack.i.l.bf16 %v2952_v14  ;;  %v2947_v4 = vpop.permute.xlu0 %2946  ;;  %v2438_v35 = vpack.c.bf16 %v1136_v12, %v1093_v49  ;;  %vm4085_vm0 = vmmov %vm4083_vm10 }
 0x177   : > { %v2949_v48 = vunpack.i.h.bf16 %v2947_v4  ;;  %v2948_v30 = vunpack.i.l.bf16 %v2947_v4  ;;  %vm4086_vm1 = vmmov %vm4085_vm0 }
 0x178   : > { %v1219_v61 = vsel %vm4074_vm2, %v4073_v63, %v2953_v16  ;;  %2439 = vmatprep.subr.bf16.mxu1 %v2438_v35  ;;  %v1220_v5 = vsel %vm4075_vm3, %v2953_v16, %v2954_v15 }
 0x179   : > { %v1176_v25 = vsel %vm4077_vm4, %v4076_v10, %v2948_v30  ;;  %2441 = vmatpush1.bf16.msra.mxu1 %v2440_v38  ;;  %v2962_v44 = vpop.permute.xlu1 %2961  ;;  %v1177_v62 = vsel %vm4078_vm5, %v2948_v30, %v2949_v48 }
 0x17a   : > { %v2392_v51 = vpack.c.bf16 %v1219_v61, %v1176_v25  ;;  %v2964_v6 = vunpack.i.h.bf16 %v2962_v44  ;;  %v2963_v24 = vunpack.i.l.bf16 %v2962_v44  ;;  %v2957_v31 = vpop.permute.xlu0 %2956  ;;  %v2390_v56 = vpack.c.bf16 %v1220_v5, %v1177_v62 }
 0x17b   : > { %v2959_v29 = vunpack.i.h.bf16 %v2957_v31  ;;  %v2958_v55 = vunpack.i.l.bf16 %v2957_v31 }
 0x17c   : > { %v1221_v52 = vsel %vm4079_vm6, %v2954_v15, %v2963_v24  ;;  %2391 = vmatprep.subr.bf16.mxu0 %v2390_v56  ;;  %v1222_v17 = vsel %vm4080_vm7, %v2963_v24, %v2964_v6 }
 0x17d   : > { %v1178_v18 = vsel %vm4081_vm8, %v2949_v48, %v2958_v55  ;;  %2393 = vmatpush1.bf16.msra.mxu0 %v2392_v51  ;;  %v2972_v28 = vpop.permute.xlu1 %2971  ;;  %v1179_v54 = vsel %vm4082_vm9, %v2958_v55, %v2959_v29 }
 0x17e   : > { %v2444_v40 = vpack.c.bf16 %v1221_v52, %v1178_v18  ;;  %v2974_v22 = vunpack.i.h.bf16 %v2972_v28  ;;  %v2973_v59 = vunpack.i.l.bf16 %v2972_v28  ;;  %v2967_v3 = vpop.permute.xlu0 %2966  ;;  %v2442_v23 = vpack.c.bf16 %v1222_v17, %v1179_v54  ;;  %v1968_v18 = vld [vmem:[%s3968_s2] sm:$0xff] }
 0x17f   : > { %v2969_v2 = vunpack.i.h.bf16 %v2967_v3  ;;  %v2968_v11 = vunpack.i.l.bf16 %v2967_v3 }
 0x180   : > { %v1305_v8 = vsel %vm1300_vm15, %v3715_v47, %v2973_v59  ;;  %2443 = vmatprep.subr.bf16.mxu1 %v2442_v23  ;;  %v1306_v13 = vsel %vm1300_vm15, %v2973_v59, %v2974_v22 }
 0x181   : > { %v1262_v7 = vsel %vm4083_vm10, %v3705_v33, %v2968_v11  ;;  %2445 = vmatpush1.bf16.msra.mxu1 %v2444_v40  ;;  %v2982_v34 = vpop.permute.xlu1 %2981  ;;  %v1263_v50 = vsel %vm4084_vm11, %v2968_v11, %v2969_v2 }
 0x182   : > { %v2396_v21 = vpack.c.bf16 %v1305_v8, %v1262_v7  ;;  %v2984_v57 = vunpack.i.h.bf16 %v2982_v34  ;;  %v2983_v36 = vunpack.i.l.bf16 %v2982_v34  ;;  %v2977_v42 = vpop.permute.xlu0 %2976  ;;  %v2394_v39 = vpack.c.bf16 %v1306_v13, %v1263_v50 }
 0x183   : > { %v2979_v27 = vunpack.i.h.bf16 %v2977_v42  ;;  %v2978_v9 = vunpack.i.l.bf16 %v2977_v42 }
 0x184   : > { %v1307_v43 = vsel %vm1300_vm15, %v2974_v22, %v2983_v36  ;;  %2395 = vmatprep.subr.bf16.mxu0 %v2394_v39  ;;  %v1308_v47 = vsel %vm1300_vm15, %v2983_v36, %v2984_v57 }
 0x185   : > { %v1264_v1 = vsel %vm4085_vm0, %v2969_v2, %v2978_v9  ;;  %2397 = vmatpush1.bf16.msra.mxu0 %v2396_v21  ;;  %v2992_v33 = vpop.permute.xlu1 %2991  ;;  %v1265_v37 = vsel %vm4086_vm1, %v2978_v9, %v2979_v27 }
 0x186   : > { %v2448_v32 = vpack.c.bf16 %v1307_v43, %v1264_v1  ;;  %v2994_v60 = vunpack.i.h.bf16 %v2992_v33  ;;  %v2993_v41 = vunpack.i.l.bf16 %v2992_v33  ;;  %v2987_v0 = vpop.permute.xlu0 %2986  ;;  %v2446_v45 = vpack.c.bf16 %v1308_v47, %v1265_v37 }
 0x187   : > { %v2989_v26 = vunpack.i.h.bf16 %v2987_v0  ;;  %v2988_v12 = vunpack.i.l.bf16 %v2987_v0 }
 0x188   : > { %v1391_v19 = vsel %vm1386_vm13, %v3742_v53, %v2993_v41  ;;  %2447 = vmatprep.subr.bf16.mxu1 %v2446_v45  ;;  %v1392_v14 = vsel %vm1386_vm13, %v2993_v41, %v2994_v60 }
 0x189   : > { %v1348_v49 = vsel %vm1343_vm12, %v3731_v58, %v2988_v12  ;;  %2449 = vmatpush1.bf16.msra.mxu1 %v2448_v32  ;;  %v3002_v38 = vpop.permute.xlu1 %3001  ;;  %v1349_v15 = vsel %vm1343_vm12, %v2988_v12, %v2989_v26 }
 0x18a   : > { %v2400_v16 = vpack.c.bf16 %v1391_v19, %v1348_v49  ;;  %v3004_v4 = vunpack.i.h.bf16 %v3002_v38  ;;  %v3003_v35 = vunpack.i.l.bf16 %v3002_v38  ;;  %v2997_v48 = vpop.permute.xlu0 %2996  ;;  %v2398_v30 = vpack.c.bf16 %v1392_v14, %v1349_v15 }
 0x18b   : > { %v2999_v63 = vunpack.i.h.bf16 %v2997_v48  ;;  %v2998_v61 = vunpack.i.l.bf16 %v2997_v48 }
 0x18c   : > { %v1393_v5 = vsel %vm1386_vm13, %v2994_v60, %v3003_v35  ;;  %2399 = vmatprep.subr.bf16.mxu0 %v2398_v30  ;;  %v1394_v53 = vsel %vm1386_vm13, %v3003_v35, %v3004_v4 }
 0x18d   : > { %v1350_v10 = vsel %vm1343_vm12, %v2989_v26, %v2998_v61  ;;  %2401 = vmatpush1.bf16.msra.mxu0 %v2400_v16  ;;  %v1424_v58 = vpop.permute.xlu1 %1423  ;;  %v1351_v25 = vsel %vm1343_vm12, %v2998_v61, %v2999_v63  ;;  %vm2027_vm12 = vcmask 7168  }
 0x18e   : > { %v2452_v44 = vpack.c.bf16 %v1393_v5, %v1350_v10  ;;  %v1422_v62 = vpop.permute.xlu0 %1421  ;;  %v2450_v51 = vpack.c.bf16 %v1394_v53, %v1351_v25 }
 0x18f   : > { %v1434_v6 = vsel %vm1429_vm14, %v3772_v20, %v1422_v62  ;;  %v1435_v24 = vsel %vm1429_vm14, %v1422_v62, %v1424_v58  ;;  %v1970_v20 = vlaneseq }
 0x190   : > { %1870 = vmatprep.subr.mxu0 %v1435_v24  ;;  %2451 = vmatprep.subr.bf16.mxu1 %v2450_v51 }
 0x191   : > { %1871 = vmatpush1.msra.mxu0 %v1434_v6  ;;  %2453 = vmatpush1.bf16.msra.mxu1 %v2452_v44  ;;  %v1428_v31 = vpop.permute.xlu1 %1427  ;;  %v1971_v52 = vshrl.u32 %v1970_v20, 7 }
 0x192   : > { %v1426_v56 = vpop.permute.xlu0 %1425  ;;  %1883 = vmatmul.mubr.f32.vlgmr.msra.gmra.mrb[2].mxu0 %v3758_v46 }
 0x193   : > { %v1436_v29 = vsel %vm1429_vm14, %v1424_v58, %v1426_v56  ;;  %v1437_v55 = vsel %vm1429_vm14, %v1426_v56, %v1428_v31  ;;  %v1972_v17 = vsub.s32 0, %v1971_v52  ;;  %v1976_v28 = vsub.s32 1, %v1971_v52 }
 0x194   : > { %1941 = vmatprep.subr.mxu1 %v1437_v55  ;;  %v1980_v3 = vsub.s32 2, %v1971_v52  ;;  %v1984_v2 = vsub.s32 3, %v1971_v52  ;;  %v1988_v33 = vsub.s32 4, %v1971_v52  ;;  %v1992_v37 = vsub.s32 5, %v1971_v52 }
 0x195   : > { %1942 = vmatpush1.msra.mxu1 %v1436_v29  ;;  %v1973_v54 = vrot.slane %v1968_v18, %v1972_v17  ;;  %v1977_v40 = vrot.slane %v1968_v18, %v1976_v28  ;;  %v1996_v60 = vsub.s32 6, %v1971_v52  ;;  %v2000_v0 = vsub.s32 7, %v1971_v52 }
 0x196   : > { %1954 = vmatmul.mubr.f32.vlgmr.msra.gmra.mrb[2].mxu1 %v3758_v46  ;;  %v1981_v7 = vrot.slane %v1968_v18, %v1980_v3  ;;  %v1985_v50 = vrot.slane %v1968_v18, %v1984_v2  ;;  %v1989_v32 = vrot.slane %v1968_v18, %v1988_v33  ;;  %v1993_v41 = vrot.slane %v1968_v18, %v1992_v37 }
 0x197   : > { %v1997_v19 = vrot.slane %v1968_v18, %v1996_v60  ;;  %v2001_v49 = vrot.slane %v1968_v18, %v2000_v0 }
 0x1fd   : > { %v1742_v46 = vpop.f32.mrb[0].mxu0 }
 0x1fe   : > { %1960 = vst [vmem:[%s3940_s16] sm:$0xff] %v1742_v46  ;;  %v2010_v22 = vmul.f32 %v1973_v54, %v1742_v46  ;;  %v1744_v59 = vpop.f32.mrb[1].mxu0 }
 0x1ff   : > { %1961 = vst [vmem:[%s3940_s16 + $0x8] sm:$0xff] %v1744_v59  ;;  %v2011_v23 = vmul.f32 %v1977_v40, %v1744_v59 }
 0x200   : > { %v2029_v11 = vmul.f32 %v2010_v22, %v1742_v46 }
 0x201   : > { %v2018_v8 = vadd.f32 %v2011_v23, %v2010_v22  ;;  %v2030_v13 = vmul.f32 %v2011_v23, %v1744_v59 }
 0x203   : > { %v2037_v34 = vadd.f32 %v2030_v13, %v2029_v11 }
 0x205   : > { %v1813_v21 = vpop.f32.mrb[0].mxu1 }
 0x206   : > { %1962 = vst [vmem:[%s3940_s16 + $0x10] sm:$0xff] %v1813_v21  ;;  %v2012_v57 = vmul.f32 %v1981_v7, %v1813_v21  ;;  %v1815_v36 = vpop.f32.mrb[1].mxu1 }
 0x207   : > { %1963 = vst [vmem:[%s3940_s16 + $0x18] sm:$0xff] %v1815_v36  ;;  %v2013_v42 = vmul.f32 %v1985_v50, %v1815_v36 }
 0x208   : > { %v2019_v39 = vadd.f32 %v2018_v8, %v2012_v57  ;;  %v2031_v27 = vmul.f32 %v2012_v57, %v1813_v21 }
 0x209   : > { %v2032_v9 = vmul.f32 %v2013_v42, %v1815_v36 }
 0x20a   : > { %v2038_v43 = vadd.f32 %v2037_v34, %v2031_v27  ;;  %v2020_v47 = vadd.f32 %v2019_v39, %v2013_v42 }
 0x20c   : > { %v2039_v1 = vadd.f32 %v2038_v43, %v2032_v9 }
 0x265   : > { %v1884_v45 = vpop.f32.mrb[2].mxu0 }
 0x266   : > { %1964 = vst [vmem:[%s3940_s16 + $0x20] sm:$0xff] %v1884_v45  ;;  %v2014_v26 = vmul.f32 %v1989_v32, %v1884_v45  ;;  %v1886_v12 = vpop.f32.mrb[3].mxu0 }
 0x267   : > { %1965 = vst [vmem:[%s3940_s16 + $0x28] sm:$0xff] %v1886_v12  ;;  %v2015_v14 = vmul.f32 %v1993_v41, %v1886_v12 }
 0x268   : > { %v2021_v38 = vadd.f32 %v2020_v47, %v2014_v26  ;;  %v2033_v15 = vmul.f32 %v2014_v26, %v1884_v45 }
 0x269   : > { %v2034_v16 = vmul.f32 %v2015_v14, %v1886_v12  ;;  %v1955_v4 = vpop.f32.mrb[2].mxu1 }
 0x26a   : > { %v2040_v35 = vadd.f32 %v2039_v1, %v2033_v15  ;;  %v2022_v48 = vadd.f32 %v2021_v38, %v2015_v14  ;;  %1966 = vst [vmem:[%s3940_s16 + $0x30] sm:$0xff] %v1955_v4  ;;  %v2016_v30 = vmul.f32 %v1997_v19, %v1955_v4  ;;  %v1957_v63 = vpop.f32.mrb[3].mxu1 }
 0x26b   : > { %1967 = vst [vmem:[%s3940_s16 + $0x38] sm:$0xff] %v1957_v63  ;;  %v2017_v61 = vmul.f32 %v2001_v49, %v1957_v63 }
 0x26c   : > { %v2041_v5 = vadd.f32 %v2040_v35, %v2034_v16  ;;  %v2023_v53 = vadd.f32 %v2022_v48, %v2016_v30  ;;  %v2035_v10 = vmul.f32 %v2016_v30, %v1955_v4 }
 0x26d   : > { %v2036_v58 = vmul.f32 %v2017_v61, %v1957_v63 }
 0x26e   : > { %v2042_v25 = vadd.f32 %v2041_v5, %v2035_v10  ;;  %v2024_v44 = vadd.f32 %v2023_v53, %v2017_v61 }
 0x270   : > { %v2043_v62 = vadd.f32 %v2042_v25, %v2036_v58  ;;  %2025 = vadd.xlane.f32.xlu0 %v2024_v44 }
 0x272   : > { %2044 = vadd.xlane.f32.xlu1 %v2043_v62 }
 0x2fd   : > { %v2026_v51 = vpop.xlane.xlu0 %2025 }
 0x2fe   : > { %2028 = vst.msk [vmem:[%s296_s26] sm:$0xff] %vm2027_vm12, %v2026_v51 }
 0x2ff   : > { %v2045_v6 = vpop.xlane.xlu1 %2044 }
 0x300   : > { %2046 = vst.msk [vmem:[%s303_s28] sm:$0xff] %vm2027_vm12, %v2045_v6 }
 0x301 PF: > { %s16_s20 = sadd.s32 1, %s3033_s20   ;;  %s4087_s18 = smov %s3029_s19 }
 0x302   : > { %p13_p5 = scmp.ge.s32.totalorder %s16_s20, 4   ;;  %s4088_s19 = smov %s4090_s21 }
 0x304   :  { %15 = sbr.rel (!%p13_p5) target bundleno = 2 (0x2), region = 93 }

</bundles_post_ra>
